<compile_context>
chip_gen: v5e
topology: v5e:2x2
jax: 0.10.0
libtpu: 0.0.40
codegen_flags: <defaults>
</compile_context>

<pallas_src>
import jax
import jax.numpy as jnp
from jax.experimental import pallas as pl
from jax.experimental.pallas import tpu as pltpu


def _round_up(x, m):
    return (x + m - 1) // m * m


# --------------------------- fused model kernel ------------------------------
def _make_fused_kernel(S, B, I, H, n_layers, OP):
    """Builds the fused kernel for static (S, B, I, H, n_layers, OP)."""

    def kernel(*refs):
        # refs = [x] + n_layers*[wi, wh, b_comb, bh_n] + [fc_w, fc_b]
        #        + [out_ref, hidden_ref] + [act_scratch]
        x_ref = refs[0]
        idx = 1
        layer_refs = []
        for _ in range(n_layers):
            layer_refs.append(refs[idx:idx + 4])
            idx += 4
        fcw_ref = refs[idx]
        fcb_ref = refs[idx + 1]
        out_ref = refs[idx + 2]
        hid_ref = refs[idx + 3]
        act_ref = refs[idx + 4]          # (S*B, H) VMEM scratch, reused per layer

        cur = x_ref[...]                 # (S*B, in_dim), time-major rows (t*B + b)

        for l in range(n_layers):
            wi_ref, wh_ref, bc_ref, bhn_ref = layer_refs[l]

            # Hoisted input->gates matmul for ALL timesteps at once.
            # b_comb = [b_ih_r + b_hh_r, b_ih_z + b_hh_z, b_ih_n] folded in once.
            gi = (jnp.dot(cur, wi_ref[...], preferred_element_type=jnp.float32)
                  + bc_ref[...])                              # (S*B, 3H)

            wh = wh_ref[...]                                  # (H, 3H)
            bhn = bhn_ref[...]                                # (1, H)
            h = jnp.zeros((B, H), jnp.float32)

            # Serial recurrence: only h @ W_hh + gate math per step.
            for t in range(S):                                # statically unrolled
                gi_t = gi[t * B:(t + 1) * B, :]               # (B, 3H)
                gh = jnp.dot(h, wh, preferred_element_type=jnp.float32)  # (B, 3H)
                r = jax.nn.sigmoid(gi_t[:, 0:H] + gh[:, 0:H])
                z = jax.nn.sigmoid(gi_t[:, H:2 * H] + gh[:, H:2 * H])
                n = jnp.tanh(gi_t[:, 2 * H:3 * H] + r * (gh[:, 2 * H:3 * H] + bhn))
                h = (1.0 - z) * n + z * h
                act_ref[t * B:(t + 1) * B, :] = h

            hid_ref[l] = h                                    # final hidden, layer l
            cur = act_ref[...]                                # (S*B, H) for next layer

        # Final FC on all rows at once; OP is padded to a multiple of 128 so the
        # store is lane-dense (unmasked vst).
        out_ref[...] = (jnp.dot(cur, fcw_ref[...], preferred_element_type=jnp.float32)
                        + fcb_ref[...])

    return kernel


# ------------------------------ Model wrapper --------------------------------
def init_params(key, input_size, output_size, hidden_dim, n_layers):
    """Deterministic init mirroring nn.GRU / nn.Linear shapes (U(-k, k))."""
    params = {"layers": []}
    k_gru = 1.0 / jnp.sqrt(hidden_dim)
    for layer in range(n_layers):
        in_dim = input_size if layer == 0 else hidden_dim
        key, k1, k2, k3, k4 = jax.random.split(key, 5)
        wi = jax.random.uniform(k1, (in_dim, 3 * hidden_dim), jnp.float32, -k_gru, k_gru)
        wh = jax.random.uniform(k2, (hidden_dim, 3 * hidden_dim), jnp.float32, -k_gru, k_gru)
        bi = jax.random.uniform(k3, (1, 3 * hidden_dim), jnp.float32, -k_gru, k_gru)
        bh = jax.random.uniform(k4, (1, 3 * hidden_dim), jnp.float32, -k_gru, k_gru)
        params["layers"].append((wi, wh, bi, bh))
    k_fc = 1.0 / jnp.sqrt(hidden_dim)
    key, k5, k6 = jax.random.split(key, 3)
    params["fc_w"] = jax.random.uniform(k5, (hidden_dim, output_size), jnp.float32, -k_fc, k_fc)
    params["fc_b"] = jax.random.uniform(k6, (1, output_size), jnp.float32, -k_fc, k_fc)
    return params


@jax.jit
def model_forward(x, params):
    """x: (batch, seq, input_size) -> (out, hidden)

    out:    (batch*seq, output_size)
    hidden: (n_layers, batch, hidden_dim)
    """
    B, S, I = x.shape
    n_layers = len(params["layers"])
    H = params["layers"][0][1].shape[0]
    O = params["fc_w"].shape[1]
    OP = _round_up(O, 128)   # lane-dense padded FC output width

    # Time-major flattened input for the hoisted gate matmul (tiny XLA reorder).
    x_tm = jnp.transpose(x, (1, 0, 2)).astype(jnp.float32).reshape(S * B, I)

    args = [x_tm]
    in_specs = [pl.BlockSpec((S * B, I), lambda: (0, 0))]
    for (wi, wh, bi, bh) in params["layers"]:
        b_comb = jnp.concatenate([bi[:, :2 * H] + bh[:, :2 * H], bi[:, 2 * H:]], axis=1)
        bh_n = bh[:, 2 * H:]
        in_dim = wi.shape[0]
        args += [wi, wh, b_comb, bh_n]
        in_specs += [
            pl.BlockSpec((in_dim, 3 * H), lambda: (0, 0)),
            pl.BlockSpec((H, 3 * H), lambda: (0, 0)),
            pl.BlockSpec((1, 3 * H), lambda: (0, 0)),
            pl.BlockSpec((1, H), lambda: (0, 0)),
        ]

    # Zero-pad FC weights/bias to 128 lanes so the kernel's output store is dense.
    fcw_p = jnp.zeros((H, OP), jnp.float32).at[:, :O].set(params["fc_w"])
    fcb_p = jnp.zeros((1, OP), jnp.float32).at[:, :O].set(params["fc_b"])
    args += [fcw_p, fcb_p]
    in_specs += [pl.BlockSpec((H, OP), lambda: (0, 0)),
                 pl.BlockSpec((1, OP), lambda: (0, 0))]

    out_tm, hidden = pl.pallas_call(
        _make_fused_kernel(S, B, I, H, n_layers, OP),
        out_shape=(
            jax.ShapeDtypeStruct((S * B, OP), jnp.float32),      # time-major FC result
            jax.ShapeDtypeStruct((n_layers, B, H), jnp.float32),  # final hidden states
        ),
        in_specs=in_specs,
        out_specs=(
            pl.BlockSpec((S * B, OP), lambda: (0, 0)),
            pl.BlockSpec((n_layers, B, H), lambda: (0, 0, 0)),
        ),
        scratch_shapes=[pltpu.VMEM((S * B, H), jnp.float32)],
    )(*args)

    # Reorder the tiny (S*B, OP) result to PyTorch batch_first flattened rows
    # (b*S + t) and strip lane padding (cheap XLA layout plumbing).
    out = jnp.transpose(out_tm.reshape(S, B, OP), (1, 0, 2)).reshape(B * S, OP)[:, :O]
    return out, hidden


# ------------------------------- Reference -----------------------------------
def reference_forward(x, params):
    """Pure-JAX GRU reference (PyTorch semantics) for correctness checking."""
    B, S, _ = x.shape
    cur = jnp.transpose(x, (1, 0, 2)).astype(jnp.float32)  # (S, B, I)
    finals = []
    for (wi, wh, bi, bh) in params["layers"]:
        H = wh.shape[0]
        h = jnp.zeros((B, H), jnp.float32)
        outs = []
        for t in range(S):
            gi = cur[t] @ wi + bi
            gh = h @ wh + bh
            r = jax.nn.sigmoid(gi[:, :H] + gh[:, :H])
            z = jax.nn.sigmoid(gi[:, H:2 * H] + gh[:, H:2 * H])
            n = jnp.tanh(gi[:, 2 * H:] + r * gh[:, 2 * H:])
            h = (1.0 - z) * n + z * h
            outs.append(h)
        cur = jnp.stack(outs, axis=0)
        finals.append(h)
    hidden = jnp.stack(finals, axis=0)
    out = jnp.transpose(cur, (1, 0, 2)).reshape(B * S, -1) @ params["fc_w"] + params["fc_b"]
    return out, hidden


if __name__ == "__main__":
    input_size = 16
    output_size = 24
    hidden_dim = 32
    n_layers = 2
    batch = 2
    seq = 8

    key = jax.random.PRNGKey(0)
    kp, kx = jax.random.split(key)
    params = init_params(kp, input_size, output_size, hidden_dim, n_layers)
    x = jax.random.normal(kx, (batch, seq, input_size), jnp.float32)

    out, hidden = model_forward(x, params)
    out = jax.block_until_ready(out)
    hidden = jax.block_until_ready(hidden)

    assert out.shape == (batch * seq, output_size), out.shape
    assert hidden.shape == (n_layers, batch, hidden_dim), hidden.shape

    ref_out, ref_hidden = reference_forward(x, params)
    assert jnp.allclose(out, ref_out, atol=1e-4, rtol=1e-4)
    assert jnp.allclose(hidden, ref_hidden, atol=1e-4, rtol=1e-4)

    print("KERNEL_OK")
</pallas_src>

<mosaic_0001>
module attributes {stable_mosaic.version = 11 : i64} {
  func.func @kernel(%arg0: memref<16x16xf32, #tpu.memory_space<vmem>>, %arg1: memref<16x96xf32, #tpu.memory_space<vmem>>, %arg2: memref<32x96xf32, #tpu.memory_space<vmem>>, %arg3: memref<1x96xf32, #tpu.memory_space<vmem>>, %arg4: memref<1x32xf32, #tpu.memory_space<vmem>>, %arg5: memref<32x96xf32, #tpu.memory_space<vmem>>, %arg6: memref<32x96xf32, #tpu.memory_space<vmem>>, %arg7: memref<1x96xf32, #tpu.memory_space<vmem>>, %arg8: memref<1x32xf32, #tpu.memory_space<vmem>>, %arg9: memref<32x128xf32, #tpu.memory_space<vmem>>, %arg10: memref<1x128xf32, #tpu.memory_space<vmem>>, %arg11: memref<16x128xf32, #tpu.memory_space<vmem>>, %arg12: memref<2x2x32xf32, #tpu.memory_space<vmem>>, %arg13: memref<16x32xf32, #tpu.memory_space<vmem>>) attributes {dimension_semantics = [], scalar_prefetch = 0 : i64, scratch_operands = 1 : i64, tpu.core_type = #tpu.core_type<tc>} {
    %c0 = arith.constant 0 : index
    %c0_0 = arith.constant 0 : index
    %0 = vector.load %arg0[%c0, %c0_0] : memref<16x16xf32, #tpu.memory_space<vmem>>, vector<16x16xf32>
    %c0_1 = arith.constant 0 : index
    %c0_2 = arith.constant 0 : index
    %1 = vector.load %arg1[%c0_1, %c0_2] : memref<16x96xf32, #tpu.memory_space<vmem>>, vector<16x96xf32>
    %cst = arith.constant dense<0.000000e+00> : vector<16x96xf32>
    %2 = tpu.matmul %0, %1, %cst {dimension_numbers = #tpu.dot_dimension_numbers<[1], [0], [0], [1], [0, 0, 1, 1], [], []>} : vector<16x16xf32>, vector<16x96xf32>, vector<16x96xf32> -> vector<16x96xf32>
    %c0_3 = arith.constant 0 : index
    %c0_4 = arith.constant 0 : index
    %3 = vector.load %arg3[%c0_3, %c0_4] : memref<1x96xf32, #tpu.memory_space<vmem>>, vector<1x96xf32>
    %4 = vector.broadcast %3 : vector<1x96xf32> to vector<16x96xf32>
    %5 = arith.addf %2, %4 : vector<16x96xf32>
    %c0_5 = arith.constant 0 : index
    %c0_6 = arith.constant 0 : index
    %6 = vector.load %arg2[%c0_5, %c0_6] : memref<32x96xf32, #tpu.memory_space<vmem>>, vector<32x96xf32>
    %c0_7 = arith.constant 0 : index
    %c0_8 = arith.constant 0 : index
    %7 = vector.load %arg4[%c0_7, %c0_8] : memref<1x32xf32, #tpu.memory_space<vmem>>, vector<1x32xf32>
    %cst_9 = arith.constant 0.000000e+00 : f32
    %8 = vector.broadcast %cst_9 : f32 to vector<2x32xf32>
    %9 = vector.extract_strided_slice %5 {offsets = [0, 0], sizes = [2, 96], strides = [1, 1]} : vector<16x96xf32> to vector<2x96xf32>
    %cst_10 = arith.constant dense<0.000000e+00> : vector<2x96xf32>
    %10 = tpu.matmul %8, %6, %cst_10 {dimension_numbers = #tpu.dot_dimension_numbers<[1], [0], [0], [1], [0, 0, 1, 1], [], []>} : vector<2x32xf32>, vector<32x96xf32>, vector<2x96xf32> -> vector<2x96xf32>
    %11 = vector.extract_strided_slice %9 {offsets = [0, 0], sizes = [2, 32], strides = [1, 1]} : vector<2x96xf32> to vector<2x32xf32>
    %12 = vector.extract_strided_slice %10 {offsets = [0, 0], sizes = [2, 32], strides = [1, 1]} : vector<2x96xf32> to vector<2x32xf32>
    %13 = arith.addf %11, %12 : vector<2x32xf32>
    %14 = arith.negf %13 : vector<2x32xf32>
    %15 = math.exp %14 : vector<2x32xf32>
    %cst_11 = arith.constant 1.000000e+00 : f32
    %16 = vector.broadcast %cst_11 : f32 to vector<2x32xf32>
    %17 = arith.addf %16, %15 : vector<2x32xf32>
    %18 = arith.divf %16, %17 : vector<2x32xf32>
    %19 = vector.extract_strided_slice %9 {offsets = [0, 32], sizes = [2, 32], strides = [1, 1]} : vector<2x96xf32> to vector<2x32xf32>
    %20 = vector.extract_strided_slice %10 {offsets = [0, 32], sizes = [2, 32], strides = [1, 1]} : vector<2x96xf32> to vector<2x32xf32>
    %21 = arith.addf %19, %20 : vector<2x32xf32>
    %22 = arith.negf %21 : vector<2x32xf32>
    %23 = math.exp %22 : vector<2x32xf32>
    %cst_12 = arith.constant 1.000000e+00 : f32
    %24 = vector.broadcast %cst_12 : f32 to vector<2x32xf32>
    %25 = arith.addf %24, %23 : vector<2x32xf32>
    %26 = arith.divf %24, %25 : vector<2x32xf32>
    %27 = vector.extract_strided_slice %9 {offsets = [0, 64], sizes = [2, 32], strides = [1, 1]} : vector<2x96xf32> to vector<2x32xf32>
    %28 = vector.extract_strided_slice %10 {offsets = [0, 64], sizes = [2, 32], strides = [1, 1]} : vector<2x96xf32> to vector<2x32xf32>
    %29 = vector.broadcast %7 : vector<1x32xf32> to vector<2x32xf32>
    %30 = arith.addf %28, %29 : vector<2x32xf32>
    %31 = arith.mulf %18, %30 : vector<2x32xf32>
    %32 = arith.addf %27, %31 : vector<2x32xf32>
    %33 = math.tanh %32 : vector<2x32xf32>
    %cst_13 = arith.constant 1.000000e+00 : f32
    %34 = vector.broadcast %cst_13 : f32 to vector<2x32xf32>
    %35 = arith.subf %34, %26 : vector<2x32xf32>
    %36 = arith.mulf %35, %33 : vector<2x32xf32>
    %37 = arith.mulf %26, %8 : vector<2x32xf32>
    %38 = arith.addf %36, %37 : vector<2x32xf32>
    %c0_14 = arith.constant 0 : index
    %c0_15 = arith.constant 0 : index
    %39 = vector.load %arg13[%c0_14, %c0_15] : memref<16x32xf32, #tpu.memory_space<vmem>>, vector<2x32xf32>
    tpu.vector_store %arg13[%c0_14, %c0_15], %38 {strides = array<i32>} : memref<16x32xf32, #tpu.memory_space<vmem>>, vector<2x32xf32>,
    %40 = vector.extract_strided_slice %5 {offsets = [2, 0], sizes = [2, 96], strides = [1, 1]} : vector<16x96xf32> to vector<2x96xf32>
    %cst_16 = arith.constant dense<0.000000e+00> : vector<2x96xf32>
    %41 = tpu.matmul %38, %6, %cst_16 {dimension_numbers = #tpu.dot_dimension_numbers<[1], [0], [0], [1], [0, 0, 1, 1], [], []>} : vector<2x32xf32>, vector<32x96xf32>, vector<2x96xf32> -> vector<2x96xf32>
    %42 = vector.extract_strided_slice %40 {offsets = [0, 0], sizes = [2, 32], strides = [1, 1]} : vector<2x96xf32> to vector<2x32xf32>
    %43 = vector.extract_strided_slice %41 {offsets = [0, 0], sizes = [2, 32], strides = [1, 1]} : vector<2x96xf32> to vector<2x32xf32>
    %44 = arith.addf %42, %43 : vector<2x32xf32>
    %45 = arith.negf %44 : vector<2x32xf32>
    %46 = math.exp %45 : vector<2x32xf32>
    %cst_17 = arith.constant 1.000000e+00 : f32
    %47 = vector.broadcast %cst_17 : f32 to vector<2x32xf32>
    %48 = arith.addf %47, %46 : vector<2x32xf32>
    %49 = arith.divf %47, %48 : vector<2x32xf32>
    %50 = vector.extract_strided_slice %40 {offsets = [0, 32], sizes = [2, 32], strides = [1, 1]} : vector<2x96xf32> to vector<2x32xf32>
    %51 = vector.extract_strided_slice %41 {offsets = [0, 32], sizes = [2, 32], strides = [1, 1]} : vector<2x96xf32> to vector<2x32xf32>
    %52 = arith.addf %50, %51 : vector<2x32xf32>
    %53 = arith.negf %52 : vector<2x32xf32>
    %54 = math.exp %53 : vector<2x32xf32>
    %cst_18 = arith.constant 1.000000e+00 : f32
    %55 = vector.broadcast %cst_18 : f32 to vector<2x32xf32>
    %56 = arith.addf %55, %54 : vector<2x32xf32>
    %57 = arith.divf %55, %56 : vector<2x32xf32>
    %58 = vector.extract_strided_slice %40 {offsets = [0, 64], sizes = [2, 32], strides = [1, 1]} : vector<2x96xf32> to vector<2x32xf32>
    %59 = vector.extract_strided_slice %41 {offsets = [0, 64], sizes = [2, 32], strides = [1, 1]} : vector<2x96xf32> to vector<2x32xf32>
    %60 = vector.broadcast %7 : vector<1x32xf32> to vector<2x32xf32>
    %61 = arith.addf %59, %60 : vector<2x32xf32>
    %62 = arith.mulf %49, %61 : vector<2x32xf32>
    %63 = arith.addf %58, %62 : vector<2x32xf32>
    %64 = math.tanh %63 : vector<2x32xf32>
    %cst_19 = arith.constant 1.000000e+00 : f32
    %65 = vector.broadcast %cst_19 : f32 to vector<2x32xf32>
    %66 = arith.subf %65, %57 : vector<2x32xf32>
    %67 = arith.mulf %66, %64 : vector<2x32xf32>
    %68 = arith.mulf %57, %38 : vector<2x32xf32>
    %69 = arith.addf %67, %68 : vector<2x32xf32>
    %c2 = arith.constant 2 : index
    %c0_20 = arith.constant 0 : index
    %70 = vector.load %arg13[%c2, %c0_20] : memref<16x32xf32, #tpu.memory_space<vmem>>, vector<2x32xf32>
    tpu.vector_store %arg13[%c2, %c0_20], %69 {strides = array<i32>} : memref<16x32xf32, #tpu.memory_space<vmem>>, vector<2x32xf32>,
    %71 = vector.extract_strided_slice %5 {offsets = [4, 0], sizes = [2, 96], strides = [1, 1]} : vector<16x96xf32> to vector<2x96xf32>
    %cst_21 = arith.constant dense<0.000000e+00> : vector<2x96xf32>
    %72 = tpu.matmul %69, %6, %cst_21 {dimension_numbers = #tpu.dot_dimension_numbers<[1], [0], [0], [1], [0, 0, 1, 1], [], []>} : vector<2x32xf32>, vector<32x96xf32>, vector<2x96xf32> -> vector<2x96xf32>
    %73 = vector.extract_strided_slice %71 {offsets = [0, 0], sizes = [2, 32], strides = [1, 1]} : vector<2x96xf32> to vector<2x32xf32>
    %74 = vector.extract_strided_slice %72 {offsets = [0, 0], sizes = [2, 32], strides = [1, 1]} : vector<2x96xf32> to vector<2x32xf32>
    %75 = arith.addf %73, %74 : vector<2x32xf32>
    %76 = arith.negf %75 : vector<2x32xf32>
    %77 = math.exp %76 : vector<2x32xf32>
    %cst_22 = arith.constant 1.000000e+00 : f32
    %78 = vector.broadcast %cst_22 : f32 to vector<2x32xf32>
    %79 = arith.addf %78, %77 : vector<2x32xf32>
    %80 = arith.divf %78, %79 : vector<2x32xf32>
    %81 = vector.extract_strided_slice %71 {offsets = [0, 32], sizes = [2, 32], strides = [1, 1]} : vector<2x96xf32> to vector<2x32xf32>
    %82 = vector.extract_strided_slice %72 {offsets = [0, 32], sizes = [2, 32], strides = [1, 1]} : vector<2x96xf32> to vector<2x32xf32>
    %83 = arith.addf %81, %82 : vector<2x32xf32>
    %84 = arith.negf %83 : vector<2x32xf32>
    %85 = math.exp %84 : vector<2x32xf32>
    %cst_23 = arith.constant 1.000000e+00 : f32
    %86 = vector.broadcast %cst_23 : f32 to vector<2x32xf32>
    %87 = arith.addf %86, %85 : vector<2x32xf32>
    %88 = arith.divf %86, %87 : vector<2x32xf32>
    %89 = vector.extract_strided_slice %71 {offsets = [0, 64], sizes = [2, 32], strides = [1, 1]} : vector<2x96xf32> to vector<2x32xf32>
    %90 = vector.extract_strided_slice %72 {offsets = [0, 64], sizes = [2, 32], strides = [1, 1]} : vector<2x96xf32> to vector<2x32xf32>
    %91 = vector.broadcast %7 : vector<1x32xf32> to vector<2x32xf32>
    %92 = arith.addf %90, %91 : vector<2x32xf32>
    %93 = arith.mulf %80, %92 : vector<2x32xf32>
    %94 = arith.addf %89, %93 : vector<2x32xf32>
    %95 = math.tanh %94 : vector<2x32xf32>
    %cst_24 = arith.constant 1.000000e+00 : f32
    %96 = vector.broadcast %cst_24 : f32 to vector<2x32xf32>
    %97 = arith.subf %96, %88 : vector<2x32xf32>
    %98 = arith.mulf %97, %95 : vector<2x32xf32>
    %99 = arith.mulf %88, %69 : vector<2x32xf32>
    %100 = arith.addf %98, %99 : vector<2x32xf32>
    %c4 = arith.constant 4 : index
    %c0_25 = arith.constant 0 : index
    %101 = vector.load %arg13[%c4, %c0_25] : memref<16x32xf32, #tpu.memory_space<vmem>>, vector<2x32xf32>
    tpu.vector_store %arg13[%c4, %c0_25], %100 {strides = array<i32>} : memref<16x32xf32, #tpu.memory_space<vmem>>, vector<2x32xf32>,
    %102 = vector.extract_strided_slice %5 {offsets = [6, 0], sizes = [2, 96], strides = [1, 1]} : vector<16x96xf32> to vector<2x96xf32>
    %cst_26 = arith.constant dense<0.000000e+00> : vector<2x96xf32>
    %103 = tpu.matmul %100, %6, %cst_26 {dimension_numbers = #tpu.dot_dimension_numbers<[1], [0], [0], [1], [0, 0, 1, 1], [], []>} : vector<2x32xf32>, vector<32x96xf32>, vector<2x96xf32> -> vector<2x96xf32>
    %104 = vector.extract_strided_slice %102 {offsets = [0, 0], sizes = [2, 32], strides = [1, 1]} : vector<2x96xf32> to vector<2x32xf32>
    %105 = vector.extract_strided_slice %103 {offsets = [0, 0], sizes = [2, 32], strides = [1, 1]} : vector<2x96xf32> to vector<2x32xf32>
    %106 = arith.addf %104, %105 : vector<2x32xf32>
    %107 = arith.negf %106 : vector<2x32xf32>
    %108 = math.exp %107 : vector<2x32xf32>
    %cst_27 = arith.constant 1.000000e+00 : f32
    %109 = vector.broadcast %cst_27 : f32 to vector<2x32xf32>
    %110 = arith.addf %109, %108 : vector<2x32xf32>
    %111 = arith.divf %109, %110 : vector<2x32xf32>
    %112 = vector.extract_strided_slice %102 {offsets = [0, 32], sizes = [2, 32], strides = [1, 1]} : vector<2x96xf32> to vector<2x32xf32>
    %113 = vector.extract_strided_slice %103 {offsets = [0, 32], sizes = [2, 32], strides = [1, 1]} : vector<2x96xf32> to vector<2x32xf32>
    %114 = arith.addf %112, %113 : vector<2x32xf32>
    %115 = arith.negf %114 : vector<2x32xf32>
    %116 = math.exp %115 : vector<2x32xf32>
    %cst_28 = arith.constant 1.000000e+00 : f32
    %117 = vector.broadcast %cst_28 : f32 to vector<2x32xf32>
    %118 = arith.addf %117, %116 : vector<2x32xf32>
    %119 = arith.divf %117, %118 : vector<2x32xf32>
    %120 = vector.extract_strided_slice %102 {offsets = [0, 64], sizes = [2, 32], strides = [1, 1]} : vector<2x96xf32> to vector<2x32xf32>
    %121 = vector.extract_strided_slice %103 {offsets = [0, 64], sizes = [2, 32], strides = [1, 1]} : vector<2x96xf32> to vector<2x32xf32>
    %122 = vector.broadcast %7 : vector<1x32xf32> to vector<2x32xf32>
    %123 = arith.addf %121, %122 : vector<2x32xf32>
    %124 = arith.mulf %111, %123 : vector<2x32xf32>
    %125 = arith.addf %120, %124 : vector<2x32xf32>
    %126 = math.tanh %125 : vector<2x32xf32>
    %cst_29 = arith.constant 1.000000e+00 : f32
    %127 = vector.broadcast %cst_29 : f32 to vector<2x32xf32>
    %128 = arith.subf %127, %119 : vector<2x32xf32>
    %129 = arith.mulf %128, %126 : vector<2x32xf32>
    %130 = arith.mulf %119, %100 : vector<2x32xf32>
    %131 = arith.addf %129, %130 : vector<2x32xf32>
    %c6 = arith.constant 6 : index
    %c0_30 = arith.constant 0 : index
    %132 = vector.load %arg13[%c6, %c0_30] : memref<16x32xf32, #tpu.memory_space<vmem>>, vector<2x32xf32>
    tpu.vector_store %arg13[%c6, %c0_30], %131 {strides = array<i32>} : memref<16x32xf32, #tpu.memory_space<vmem>>, vector<2x32xf32>,
    %133 = vector.extract_strided_slice %5 {offsets = [8, 0], sizes = [2, 96], strides = [1, 1]} : vector<16x96xf32> to vector<2x96xf32>
    %cst_31 = arith.constant dense<0.000000e+00> : vector<2x96xf32>
    %134 = tpu.matmul %131, %6, %cst_31 {dimension_numbers = #tpu.dot_dimension_numbers<[1], [0], [0], [1], [0, 0, 1, 1], [], []>} : vector<2x32xf32>, vector<32x96xf32>, vector<2x96xf32> -> vector<2x96xf32>
    %135 = vector.extract_strided_slice %133 {offsets = [0, 0], sizes = [2, 32], strides = [1, 1]} : vector<2x96xf32> to vector<2x32xf32>
    %136 = vector.extract_strided_slice %134 {offsets = [0, 0], sizes = [2, 32], strides = [1, 1]} : vector<2x96xf32> to vector<2x32xf32>
    %137 = arith.addf %135, %136 : vector<2x32xf32>
    %138 = arith.negf %137 : vector<2x32xf32>
    %139 = math.exp %138 : vector<2x32xf32>
    %cst_32 = arith.constant 1.000000e+00 : f32
    %140 = vector.broadcast %cst_32 : f32 to vector<2x32xf32>
    %141 = arith.addf %140, %139 : vector<2x32xf32>
    %142 = arith.divf %140, %141 : vector<2x32xf32>
    %143 = vector.extract_strided_slice %133 {offsets = [0, 32], sizes = [2, 32], strides = [1, 1]} : vector<2x96xf32> to vector<2x32xf32>
    %144 = vector.extract_strided_slice %134 {offsets = [0, 32], sizes = [2, 32], strides = [1, 1]} : vector<2x96xf32> to vector<2x32xf32>
    %145 = arith.addf %143, %144 : vector<2x32xf32>
    %146 = arith.negf %145 : vector<2x32xf32>
    %147 = math.exp %146 : vector<2x32xf32>
    %cst_33 = arith.constant 1.000000e+00 : f32
    %148 = vector.broadcast %cst_33 : f32 to vector<2x32xf32>
    %149 = arith.addf %148, %147 : vector<2x32xf32>
    %150 = arith.divf %148, %149 : vector<2x32xf32>
    %151 = vector.extract_strided_slice %133 {offsets = [0, 64], sizes = [2, 32], strides = [1, 1]} : vector<2x96xf32> to vector<2x32xf32>
    %152 = vector.extract_strided_slice %134 {offsets = [0, 64], sizes = [2, 32], strides = [1, 1]} : vector<2x96xf32> to vector<2x32xf32>
    %153 = vector.broadcast %7 : vector<1x32xf32> to vector<2x32xf32>
    %154 = arith.addf %152, %153 : vector<2x32xf32>
    %155 = arith.mulf %142, %154 : vector<2x32xf32>
    %156 = arith.addf %151, %155 : vector<2x32xf32>
    %157 = math.tanh %156 : vector<2x32xf32>
    %cst_34 = arith.constant 1.000000e+00 : f32
    %158 = vector.broadcast %cst_34 : f32 to vector<2x32xf32>
    %159 = arith.subf %158, %150 : vector<2x32xf32>
    %160 = arith.mulf %159, %157 : vector<2x32xf32>
    %161 = arith.mulf %150, %131 : vector<2x32xf32>
    %162 = arith.addf %160, %161 : vector<2x32xf32>
    %c8 = arith.constant 8 : index
    %c0_35 = arith.constant 0 : index
    %163 = vector.load %arg13[%c8, %c0_35] : memref<16x32xf32, #tpu.memory_space<vmem>>, vector<2x32xf32>
    tpu.vector_store %arg13[%c8, %c0_35], %162 {strides = array<i32>} : memref<16x32xf32, #tpu.memory_space<vmem>>, vector<2x32xf32>,
    %164 = vector.extract_strided_slice %5 {offsets = [10, 0], sizes = [2, 96], strides = [1, 1]} : vector<16x96xf32> to vector<2x96xf32>
    %cst_36 = arith.constant dense<0.000000e+00> : vector<2x96xf32>
    %165 = tpu.matmul %162, %6, %cst_36 {dimension_numbers = #tpu.dot_dimension_numbers<[1], [0], [0], [1], [0, 0, 1, 1], [], []>} : vector<2x32xf32>, vector<32x96xf32>, vector<2x96xf32> -> vector<2x96xf32>
    %166 = vector.extract_strided_slice %164 {offsets = [0, 0], sizes = [2, 32], strides = [1, 1]} : vector<2x96xf32> to vector<2x32xf32>
    %167 = vector.extract_strided_slice %165 {offsets = [0, 0], sizes = [2, 32], strides = [1, 1]} : vector<2x96xf32> to vector<2x32xf32>
    %168 = arith.addf %166, %167 : vector<2x32xf32>
    %169 = arith.negf %168 : vector<2x32xf32>
    %170 = math.exp %169 : vector<2x32xf32>
    %cst_37 = arith.constant 1.000000e+00 : f32
    %171 = vector.broadcast %cst_37 : f32 to vector<2x32xf32>
    %172 = arith.addf %171, %170 : vector<2x32xf32>
    %173 = arith.divf %171, %172 : vector<2x32xf32>
    %174 = vector.extract_strided_slice %164 {offsets = [0, 32], sizes = [2, 32], strides = [1, 1]} : vector<2x96xf32> to vector<2x32xf32>
    %175 = vector.extract_strided_slice %165 {offsets = [0, 32], sizes = [2, 32], strides = [1, 1]} : vector<2x96xf32> to vector<2x32xf32>
    %176 = arith.addf %174, %175 : vector<2x32xf32>
    %177 = arith.negf %176 : vector<2x32xf32>
    %178 = math.exp %177 : vector<2x32xf32>
    %cst_38 = arith.constant 1.000000e+00 : f32
    %179 = vector.broadcast %cst_38 : f32 to vector<2x32xf32>
    %180 = arith.addf %179, %178 : vector<2x32xf32>
    %181 = arith.divf %179, %180 : vector<2x32xf32>
    %182 = vector.extract_strided_slice %164 {offsets = [0, 64], sizes = [2, 32], strides = [1, 1]} : vector<2x96xf32> to vector<2x32xf32>
    %183 = vector.extract_strided_slice %165 {offsets = [0, 64], sizes = [2, 32], strides = [1, 1]} : vector<2x96xf32> to vector<2x32xf32>
    %184 = vector.broadcast %7 : vector<1x32xf32> to vector<2x32xf32>
    %185 = arith.addf %183, %184 : vector<2x32xf32>
    %186 = arith.mulf %173, %185 : vector<2x32xf32>
    %187 = arith.addf %182, %186 : vector<2x32xf32>
    %188 = math.tanh %187 : vector<2x32xf32>
    %cst_39 = arith.constant 1.000000e+00 : f32
    %189 = vector.broadcast %cst_39 : f32 to vector<2x32xf32>
    %190 = arith.subf %189, %181 : vector<2x32xf32>
    %191 = arith.mulf %190, %188 : vector<2x32xf32>
    %192 = arith.mulf %181, %162 : vector<2x32xf32>
    %193 = arith.addf %191, %192 : vector<2x32xf32>
    %c10 = arith.constant 10 : index
    %c0_40 = arith.constant 0 : index
    %194 = vector.load %arg13[%c10, %c0_40] : memref<16x32xf32, #tpu.memory_space<vmem>>, vector<2x32xf32>
    tpu.vector_store %arg13[%c10, %c0_40], %193 {strides = array<i32>} : memref<16x32xf32, #tpu.memory_space<vmem>>, vector<2x32xf32>,
    %195 = vector.extract_strided_slice %5 {offsets = [12, 0], sizes = [2, 96], strides = [1, 1]} : vector<16x96xf32> to vector<2x96xf32>
    %cst_41 = arith.constant dense<0.000000e+00> : vector<2x96xf32>
    %196 = tpu.matmul %193, %6, %cst_41 {dimension_numbers = #tpu.dot_dimension_numbers<[1], [0], [0], [1], [0, 0, 1, 1], [], []>} : vector<2x32xf32>, vector<32x96xf32>, vector<2x96xf32> -> vector<2x96xf32>
    %197 = vector.extract_strided_slice %195 {offsets = [0, 0], sizes = [2, 32], strides = [1, 1]} : vector<2x96xf32> to vector<2x32xf32>
    %198 = vector.extract_strided_slice %196 {offsets = [0, 0], sizes = [2, 32], strides = [1, 1]} : vector<2x96xf32> to vector<2x32xf32>
    %199 = arith.addf %197, %198 : vector<2x32xf32>
    %200 = arith.negf %199 : vector<2x32xf32>
    %201 = math.exp %200 : vector<2x32xf32>
    %cst_42 = arith.constant 1.000000e+00 : f32
    %202 = vector.broadcast %cst_42 : f32 to vector<2x32xf32>
    %203 = arith.addf %202, %201 : vector<2x32xf32>
    %204 = arith.divf %202, %203 : vector<2x32xf32>
    %205 = vector.extract_strided_slice %195 {offsets = [0, 32], sizes = [2, 32], strides = [1, 1]} : vector<2x96xf32> to vector<2x32xf32>
    %206 = vector.extract_strided_slice %196 {offsets = [0, 32], sizes = [2, 32], strides = [1, 1]} : vector<2x96xf32> to vector<2x32xf32>
    %207 = arith.addf %205, %206 : vector<2x32xf32>
    %208 = arith.negf %207 : vector<2x32xf32>
    %209 = math.exp %208 : vector<2x32xf32>
    %cst_43 = arith.constant 1.000000e+00 : f32
    %210 = vector.broadcast %cst_43 : f32 to vector<2x32xf32>
    %211 = arith.addf %210, %209 : vector<2x32xf32>
    %212 = arith.divf %210, %211 : vector<2x32xf32>
    %213 = vector.extract_strided_slice %195 {offsets = [0, 64], sizes = [2, 32], strides = [1, 1]} : vector<2x96xf32> to vector<2x32xf32>
    %214 = vector.extract_strided_slice %196 {offsets = [0, 64], sizes = [2, 32], strides = [1, 1]} : vector<2x96xf32> to vector<2x32xf32>
    %215 = vector.broadcast %7 : vector<1x32xf32> to vector<2x32xf32>
    %216 = arith.addf %214, %215 : vector<2x32xf32>
    %217 = arith.mulf %204, %216 : vector<2x32xf32>
    %218 = arith.addf %213, %217 : vector<2x32xf32>
    %219 = math.tanh %218 : vector<2x32xf32>
    %cst_44 = arith.constant 1.000000e+00 : f32
    %220 = vector.broadcast %cst_44 : f32 to vector<2x32xf32>
    %221 = arith.subf %220, %212 : vector<2x32xf32>
    %222 = arith.mulf %221, %219 : vector<2x32xf32>
    %223 = arith.mulf %212, %193 : vector<2x32xf32>
    %224 = arith.addf %222, %223 : vector<2x32xf32>
    %c12 = arith.constant 12 : index
    %c0_45 = arith.constant 0 : index
    %225 = vector.load %arg13[%c12, %c0_45] : memref<16x32xf32, #tpu.memory_space<vmem>>, vector<2x32xf32>
    tpu.vector_store %arg13[%c12, %c0_45], %224 {strides = array<i32>} : memref<16x32xf32, #tpu.memory_space<vmem>>, vector<2x32xf32>,
    %226 = vector.extract_strided_slice %5 {offsets = [14, 0], sizes = [2, 96], strides = [1, 1]} : vector<16x96xf32> to vector<2x96xf32>
    %cst_46 = arith.constant dense<0.000000e+00> : vector<2x96xf32>
    %227 = tpu.matmul %224, %6, %cst_46 {dimension_numbers = #tpu.dot_dimension_numbers<[1], [0], [0], [1], [0, 0, 1, 1], [], []>} : vector<2x32xf32>, vector<32x96xf32>, vector<2x96xf32> -> vector<2x96xf32>
    %228 = vector.extract_strided_slice %226 {offsets = [0, 0], sizes = [2, 32], strides = [1, 1]} : vector<2x96xf32> to vector<2x32xf32>
    %229 = vector.extract_strided_slice %227 {offsets = [0, 0], sizes = [2, 32], strides = [1, 1]} : vector<2x96xf32> to vector<2x32xf32>
    %230 = arith.addf %228, %229 : vector<2x32xf32>
    %231 = arith.negf %230 : vector<2x32xf32>
    %232 = math.exp %231 : vector<2x32xf32>
    %cst_47 = arith.constant 1.000000e+00 : f32
    %233 = vector.broadcast %cst_47 : f32 to vector<2x32xf32>
    %234 = arith.addf %233, %232 : vector<2x32xf32>
    %235 = arith.divf %233, %234 : vector<2x32xf32>
    %236 = vector.extract_strided_slice %226 {offsets = [0, 32], sizes = [2, 32], strides = [1, 1]} : vector<2x96xf32> to vector<2x32xf32>
    %237 = vector.extract_strided_slice %227 {offsets = [0, 32], sizes = [2, 32], strides = [1, 1]} : vector<2x96xf32> to vector<2x32xf32>
    %238 = arith.addf %236, %237 : vector<2x32xf32>
    %239 = arith.negf %238 : vector<2x32xf32>
    %240 = math.exp %239 : vector<2x32xf32>
    %cst_48 = arith.constant 1.000000e+00 : f32
    %241 = vector.broadcast %cst_48 : f32 to vector<2x32xf32>
    %242 = arith.addf %241, %240 : vector<2x32xf32>
    %243 = arith.divf %241, %242 : vector<2x32xf32>
    %244 = vector.extract_strided_slice %226 {offsets = [0, 64], sizes = [2, 32], strides = [1, 1]} : vector<2x96xf32> to vector<2x32xf32>
    %245 = vector.extract_strided_slice %227 {offsets = [0, 64], sizes = [2, 32], strides = [1, 1]} : vector<2x96xf32> to vector<2x32xf32>
    %246 = vector.broadcast %7 : vector<1x32xf32> to vector<2x32xf32>
    %247 = arith.addf %245, %246 : vector<2x32xf32>
    %248 = arith.mulf %235, %247 : vector<2x32xf32>
    %249 = arith.addf %244, %248 : vector<2x32xf32>
    %250 = math.tanh %249 : vector<2x32xf32>
    %cst_49 = arith.constant 1.000000e+00 : f32
    %251 = vector.broadcast %cst_49 : f32 to vector<2x32xf32>
    %252 = arith.subf %251, %243 : vector<2x32xf32>
    %253 = arith.mulf %252, %250 : vector<2x32xf32>
    %254 = arith.mulf %243, %224 : vector<2x32xf32>
    %255 = arith.addf %253, %254 : vector<2x32xf32>
    %c14 = arith.constant 14 : index
    %c0_50 = arith.constant 0 : index
    %256 = vector.load %arg13[%c14, %c0_50] : memref<16x32xf32, #tpu.memory_space<vmem>>, vector<2x32xf32>
    tpu.vector_store %arg13[%c14, %c0_50], %255 {strides = array<i32>} : memref<16x32xf32, #tpu.memory_space<vmem>>, vector<2x32xf32>,
    %c0_51 = arith.constant 0 : index
    %c0_52 = arith.constant 0 : index
    %c0_53 = arith.constant 0 : index
    %257 = vector.load %arg12[%c0_51, %c0_52, %c0_53] : memref<2x2x32xf32, #tpu.memory_space<vmem>>, vector<1x2x32xf32>
    %258 = vector.shape_cast %257 : vector<1x2x32xf32> to vector<2x32xf32>
    %259 = vector.shape_cast %255 : vector<2x32xf32> to vector<1x2x32xf32>
    tpu.vector_store %arg12[%c0_51, %c0_52, %c0_53], %259 {strides = array<i32>} : memref<2x2x32xf32, #tpu.memory_space<vmem>>, vector<1x2x32xf32>,
    %c0_54 = arith.constant 0 : index
    %c0_55 = arith.constant 0 : index
    %260 = vector.load %arg13[%c0_54, %c0_55] : memref<16x32xf32, #tpu.memory_space<vmem>>, vector<16x32xf32>
    %c0_56 = arith.constant 0 : index
    %c0_57 = arith.constant 0 : index
    %261 = vector.load %arg5[%c0_56, %c0_57] : memref<32x96xf32, #tpu.memory_space<vmem>>, vector<32x96xf32>
    %cst_58 = arith.constant dense<0.000000e+00> : vector<16x96xf32>
    %262 = tpu.matmul %260, %261, %cst_58 {dimension_numbers = #tpu.dot_dimension_numbers<[1], [0], [0], [1], [0, 0, 1, 1], [], []>} : vector<16x32xf32>, vector<32x96xf32>, vector<16x96xf32> -> vector<16x96xf32>
    %c0_59 = arith.constant 0 : index
    %c0_60 = arith.constant 0 : index
    %263 = vector.load %arg7[%c0_59, %c0_60] : memref<1x96xf32, #tpu.memory_space<vmem>>, vector<1x96xf32>
    %264 = vector.broadcast %263 : vector<1x96xf32> to vector<16x96xf32>
    %265 = arith.addf %262, %264 : vector<16x96xf32>
    %c0_61 = arith.constant 0 : index
    %c0_62 = arith.constant 0 : index
    %266 = vector.load %arg6[%c0_61, %c0_62] : memref<32x96xf32, #tpu.memory_space<vmem>>, vector<32x96xf32>
    %c0_63 = arith.constant 0 : index
    %c0_64 = arith.constant 0 : index
    %267 = vector.load %arg8[%c0_63, %c0_64] : memref<1x32xf32, #tpu.memory_space<vmem>>, vector<1x32xf32>
    %cst_65 = arith.constant 0.000000e+00 : f32
    %268 = vector.broadcast %cst_65 : f32 to vector<2x32xf32>
    %269 = vector.extract_strided_slice %265 {offsets = [0, 0], sizes = [2, 96], strides = [1, 1]} : vector<16x96xf32> to vector<2x96xf32>
    %cst_66 = arith.constant dense<0.000000e+00> : vector<2x96xf32>
    %270 = tpu.matmul %268, %266, %cst_66 {dimension_numbers = #tpu.dot_dimension_numbers<[1], [0], [0], [1], [0, 0, 1, 1], [], []>} : vector<2x32xf32>, vector<32x96xf32>, vector<2x96xf32> -> vector<2x96xf32>
    %271 = vector.extract_strided_slice %269 {offsets = [0, 0], sizes = [2, 32], strides = [1, 1]} : vector<2x96xf32> to vector<2x32xf32>
    %272 = vector.extract_strided_slice %270 {offsets = [0, 0], sizes = [2, 32], strides = [1, 1]} : vector<2x96xf32> to vector<2x32xf32>
    %273 = arith.addf %271, %272 : vector<2x32xf32>
    %274 = arith.negf %273 : vector<2x32xf32>
    %275 = math.exp %274 : vector<2x32xf32>
    %cst_67 = arith.constant 1.000000e+00 : f32
    %276 = vector.broadcast %cst_67 : f32 to vector<2x32xf32>
    %277 = arith.addf %276, %275 : vector<2x32xf32>
    %278 = arith.divf %276, %277 : vector<2x32xf32>
    %279 = vector.extract_strided_slice %269 {offsets = [0, 32], sizes = [2, 32], strides = [1, 1]} : vector<2x96xf32> to vector<2x32xf32>
    %280 = vector.extract_strided_slice %270 {offsets = [0, 32], sizes = [2, 32], strides = [1, 1]} : vector<2x96xf32> to vector<2x32xf32>
    %281 = arith.addf %279, %280 : vector<2x32xf32>
    %282 = arith.negf %281 : vector<2x32xf32>
    %283 = math.exp %282 : vector<2x32xf32>
    %cst_68 = arith.constant 1.000000e+00 : f32
    %284 = vector.broadcast %cst_68 : f32 to vector<2x32xf32>
    %285 = arith.addf %284, %283 : vector<2x32xf32>
    %286 = arith.divf %284, %285 : vector<2x32xf32>
    %287 = vector.extract_strided_slice %269 {offsets = [0, 64], sizes = [2, 32], strides = [1, 1]} : vector<2x96xf32> to vector<2x32xf32>
    %288 = vector.extract_strided_slice %270 {offsets = [0, 64], sizes = [2, 32], strides = [1, 1]} : vector<2x96xf32> to vector<2x32xf32>
    %289 = vector.broadcast %267 : vector<1x32xf32> to vector<2x32xf32>
    %290 = arith.addf %288, %289 : vector<2x32xf32>
    %291 = arith.mulf %278, %290 : vector<2x32xf32>
    %292 = arith.addf %287, %291 : vector<2x32xf32>
    %293 = math.tanh %292 : vector<2x32xf32>
    %cst_69 = arith.constant 1.000000e+00 : f32
    %294 = vector.broadcast %cst_69 : f32 to vector<2x32xf32>
    %295 = arith.subf %294, %286 : vector<2x32xf32>
    %296 = arith.mulf %295, %293 : vector<2x32xf32>
    %297 = arith.mulf %286, %268 : vector<2x32xf32>
    %298 = arith.addf %296, %297 : vector<2x32xf32>
    %c0_70 = arith.constant 0 : index
    %c0_71 = arith.constant 0 : index
    %299 = vector.load %arg13[%c0_70, %c0_71] : memref<16x32xf32, #tpu.memory_space<vmem>>, vector<2x32xf32>
    tpu.vector_store %arg13[%c0_70, %c0_71], %298 {strides = array<i32>} : memref<16x32xf32, #tpu.memory_space<vmem>>, vector<2x32xf32>,
    %300 = vector.extract_strided_slice %265 {offsets = [2, 0], sizes = [2, 96], strides = [1, 1]} : vector<16x96xf32> to vector<2x96xf32>
    %cst_72 = arith.constant dense<0.000000e+00> : vector<2x96xf32>
    %301 = tpu.matmul %298, %266, %cst_72 {dimension_numbers = #tpu.dot_dimension_numbers<[1], [0], [0], [1], [0, 0, 1, 1], [], []>} : vector<2x32xf32>, vector<32x96xf32>, vector<2x96xf32> -> vector<2x96xf32>
    %302 = vector.extract_strided_slice %300 {offsets = [0, 0], sizes = [2, 32], strides = [1, 1]} : vector<2x96xf32> to vector<2x32xf32>
    %303 = vector.extract_strided_slice %301 {offsets = [0, 0], sizes = [2, 32], strides = [1, 1]} : vector<2x96xf32> to vector<2x32xf32>
    %304 = arith.addf %302, %303 : vector<2x32xf32>
    %305 = arith.negf %304 : vector<2x32xf32>
    %306 = math.exp %305 : vector<2x32xf32>
    %cst_73 = arith.constant 1.000000e+00 : f32
    %307 = vector.broadcast %cst_73 : f32 to vector<2x32xf32>
    %308 = arith.addf %307, %306 : vector<2x32xf32>
    %309 = arith.divf %307, %308 : vector<2x32xf32>
    %310 = vector.extract_strided_slice %300 {offsets = [0, 32], sizes = [2, 32], strides = [1, 1]} : vector<2x96xf32> to vector<2x32xf32>
    %311 = vector.extract_strided_slice %301 {offsets = [0, 32], sizes = [2, 32], strides = [1, 1]} : vector<2x96xf32> to vector<2x32xf32>
    %312 = arith.addf %310, %311 : vector<2x32xf32>
    %313 = arith.negf %312 : vector<2x32xf32>
    %314 = math.exp %313 : vector<2x32xf32>
    %cst_74 = arith.constant 1.000000e+00 : f32
    %315 = vector.broadcast %cst_74 : f32 to vector<2x32xf32>
    %316 = arith.addf %315, %314 : vector<2x32xf32>
    %317 = arith.divf %315, %316 : vector<2x32xf32>
    %318 = vector.extract_strided_slice %300 {offsets = [0, 64], sizes = [2, 32], strides = [1, 1]} : vector<2x96xf32> to vector<2x32xf32>
    %319 = vector.extract_strided_slice %301 {offsets = [0, 64], sizes = [2, 32], strides = [1, 1]} : vector<2x96xf32> to vector<2x32xf32>
    %320 = vector.broadcast %267 : vector<1x32xf32> to vector<2x32xf32>
    %321 = arith.addf %319, %320 : vector<2x32xf32>
    %322 = arith.mulf %309, %321 : vector<2x32xf32>
    %323 = arith.addf %318, %322 : vector<2x32xf32>
    %324 = math.tanh %323 : vector<2x32xf32>
    %cst_75 = arith.constant 1.000000e+00 : f32
    %325 = vector.broadcast %cst_75 : f32 to vector<2x32xf32>
    %326 = arith.subf %325, %317 : vector<2x32xf32>
    %327 = arith.mulf %326, %324 : vector<2x32xf32>
    %328 = arith.mulf %317, %298 : vector<2x32xf32>
    %329 = arith.addf %327, %328 : vector<2x32xf32>
    %c2_76 = arith.constant 2 : index
    %c0_77 = arith.constant 0 : index
    %330 = vector.load %arg13[%c2_76, %c0_77] : memref<16x32xf32, #tpu.memory_space<vmem>>, vector<2x32xf32>
    tpu.vector_store %arg13[%c2_76, %c0_77], %329 {strides = array<i32>} : memref<16x32xf32, #tpu.memory_space<vmem>>, vector<2x32xf32>,
    %331 = vector.extract_strided_slice %265 {offsets = [4, 0], sizes = [2, 96], strides = [1, 1]} : vector<16x96xf32> to vector<2x96xf32>
    %cst_78 = arith.constant dense<0.000000e+00> : vector<2x96xf32>
    %332 = tpu.matmul %329, %266, %cst_78 {dimension_numbers = #tpu.dot_dimension_numbers<[1], [0], [0], [1], [0, 0, 1, 1], [], []>} : vector<2x32xf32>, vector<32x96xf32>, vector<2x96xf32> -> vector<2x96xf32>
    %333 = vector.extract_strided_slice %331 {offsets = [0, 0], sizes = [2, 32], strides = [1, 1]} : vector<2x96xf32> to vector<2x32xf32>
    %334 = vector.extract_strided_slice %332 {offsets = [0, 0], sizes = [2, 32], strides = [1, 1]} : vector<2x96xf32> to vector<2x32xf32>
    %335 = arith.addf %333, %334 : vector<2x32xf32>
    %336 = arith.negf %335 : vector<2x32xf32>
    %337 = math.exp %336 : vector<2x32xf32>
    %cst_79 = arith.constant 1.000000e+00 : f32
    %338 = vector.broadcast %cst_79 : f32 to vector<2x32xf32>
    %339 = arith.addf %338, %337 : vector<2x32xf32>
    %340 = arith.divf %338, %339 : vector<2x32xf32>
    %341 = vector.extract_strided_slice %331 {offsets = [0, 32], sizes = [2, 32], strides = [1, 1]} : vector<2x96xf32> to vector<2x32xf32>
    %342 = vector.extract_strided_slice %332 {offsets = [0, 32], sizes = [2, 32], strides = [1, 1]} : vector<2x96xf32> to vector<2x32xf32>
    %343 = arith.addf %341, %342 : vector<2x32xf32>
    %344 = arith.negf %343 : vector<2x32xf32>
    %345 = math.exp %344 : vector<2x32xf32>
    %cst_80 = arith.constant 1.000000e+00 : f32
    %346 = vector.broadcast %cst_80 : f32 to vector<2x32xf32>
    %347 = arith.addf %346, %345 : vector<2x32xf32>
    %348 = arith.divf %346, %347 : vector<2x32xf32>
    %349 = vector.extract_strided_slice %331 {offsets = [0, 64], sizes = [2, 32], strides = [1, 1]} : vector<2x96xf32> to vector<2x32xf32>
    %350 = vector.extract_strided_slice %332 {offsets = [0, 64], sizes = [2, 32], strides = [1, 1]} : vector<2x96xf32> to vector<2x32xf32>
    %351 = vector.broadcast %267 : vector<1x32xf32> to vector<2x32xf32>
    %352 = arith.addf %350, %351 : vector<2x32xf32>
    %353 = arith.mulf %340, %352 : vector<2x32xf32>
    %354 = arith.addf %349, %353 : vector<2x32xf32>
    %355 = math.tanh %354 : vector<2x32xf32>
    %cst_81 = arith.constant 1.000000e+00 : f32
    %356 = vector.broadcast %cst_81 : f32 to vector<2x32xf32>
    %357 = arith.subf %356, %348 : vector<2x32xf32>
    %358 = arith.mulf %357, %355 : vector<2x32xf32>
    %359 = arith.mulf %348, %329 : vector<2x32xf32>
    %360 = arith.addf %358, %359 : vector<2x32xf32>
    %c4_82 = arith.constant 4 : index
    %c0_83 = arith.constant 0 : index
    %361 = vector.load %arg13[%c4_82, %c0_83] : memref<16x32xf32, #tpu.memory_space<vmem>>, vector<2x32xf32>
    tpu.vector_store %arg13[%c4_82, %c0_83], %360 {strides = array<i32>} : memref<16x32xf32, #tpu.memory_space<vmem>>, vector<2x32xf32>,
    %362 = vector.extract_strided_slice %265 {offsets = [6, 0], sizes = [2, 96], strides = [1, 1]} : vector<16x96xf32> to vector<2x96xf32>
    %cst_84 = arith.constant dense<0.000000e+00> : vector<2x96xf32>
    %363 = tpu.matmul %360, %266, %cst_84 {dimension_numbers = #tpu.dot_dimension_numbers<[1], [0], [0], [1], [0, 0, 1, 1], [], []>} : vector<2x32xf32>, vector<32x96xf32>, vector<2x96xf32> -> vector<2x96xf32>
    %364 = vector.extract_strided_slice %362 {offsets = [0, 0], sizes = [2, 32], strides = [1, 1]} : vector<2x96xf32> to vector<2x32xf32>
    %365 = vector.extract_strided_slice %363 {offsets = [0, 0], sizes = [2, 32], strides = [1, 1]} : vector<2x96xf32> to vector<2x32xf32>
    %366 = arith.addf %364, %365 : vector<2x32xf32>
    %367 = arith.negf %366 : vector<2x32xf32>
    %368 = math.exp %367 : vector<2x32xf32>
    %cst_85 = arith.constant 1.000000e+00 : f32
    %369 = vector.broadcast %cst_85 : f32 to vector<2x32xf32>
    %370 = arith.addf %369, %368 : vector<2x32xf32>
    %371 = arith.divf %369, %370 : vector<2x32xf32>
    %372 = vector.extract_strided_slice %362 {offsets = [0, 32], sizes = [2, 32], strides = [1, 1]} : vector<2x96xf32> to vector<2x32xf32>
    %373 = vector.extract_strided_slice %363 {offsets = [0, 32], sizes = [2, 32], strides = [1, 1]} : vector<2x96xf32> to vector<2x32xf32>
    %374 = arith.addf %372, %373 : vector<2x32xf32>
    %375 = arith.negf %374 : vector<2x32xf32>
    %376 = math.exp %375 : vector<2x32xf32>
    %cst_86 = arith.constant 1.000000e+00 : f32
    %377 = vector.broadcast %cst_86 : f32 to vector<2x32xf32>
    %378 = arith.addf %377, %376 : vector<2x32xf32>
    %379 = arith.divf %377, %378 : vector<2x32xf32>
    %380 = vector.extract_strided_slice %362 {offsets = [0, 64], sizes = [2, 32], strides = [1, 1]} : vector<2x96xf32> to vector<2x32xf32>
    %381 = vector.extract_strided_slice %363 {offsets = [0, 64], sizes = [2, 32], strides = [1, 1]} : vector<2x96xf32> to vector<2x32xf32>
    %382 = vector.broadcast %267 : vector<1x32xf32> to vector<2x32xf32>
    %383 = arith.addf %381, %382 : vector<2x32xf32>
    %384 = arith.mulf %371, %383 : vector<2x32xf32>
    %385 = arith.addf %380, %384 : vector<2x32xf32>
    %386 = math.tanh %385 : vector<2x32xf32>
    %cst_87 = arith.constant 1.000000e+00 : f32
    %387 = vector.broadcast %cst_87 : f32 to vector<2x32xf32>
    %388 = arith.subf %387, %379 : vector<2x32xf32>
    %389 = arith.mulf %388, %386 : vector<2x32xf32>
    %390 = arith.mulf %379, %360 : vector<2x32xf32>
    %391 = arith.addf %389, %390 : vector<2x32xf32>
    %c6_88 = arith.constant 6 : index
    %c0_89 = arith.constant 0 : index
    %392 = vector.load %arg13[%c6_88, %c0_89] : memref<16x32xf32, #tpu.memory_space<vmem>>, vector<2x32xf32>
    tpu.vector_store %arg13[%c6_88, %c0_89], %391 {strides = array<i32>} : memref<16x32xf32, #tpu.memory_space<vmem>>, vector<2x32xf32>,
    %393 = vector.extract_strided_slice %265 {offsets = [8, 0], sizes = [2, 96], strides = [1, 1]} : vector<16x96xf32> to vector<2x96xf32>
    %cst_90 = arith.constant dense<0.000000e+00> : vector<2x96xf32>
    %394 = tpu.matmul %391, %266, %cst_90 {dimension_numbers = #tpu.dot_dimension_numbers<[1], [0], [0], [1], [0, 0, 1, 1], [], []>} : vector<2x32xf32>, vector<32x96xf32>, vector<2x96xf32> -> vector<2x96xf32>
    %395 = vector.extract_strided_slice %393 {offsets = [0, 0], sizes = [2, 32], strides = [1, 1]} : vector<2x96xf32> to vector<2x32xf32>
    %396 = vector.extract_strided_slice %394 {offsets = [0, 0], sizes = [2, 32], strides = [1, 1]} : vector<2x96xf32> to vector<2x32xf32>
    %397 = arith.addf %395, %396 : vector<2x32xf32>
    %398 = arith.negf %397 : vector<2x32xf32>
    %399 = math.exp %398 : vector<2x32xf32>
    %cst_91 = arith.constant 1.000000e+00 : f32
    %400 = vector.broadcast %cst_91 : f32 to vector<2x32xf32>
    %401 = arith.addf %400, %399 : vector<2x32xf32>
    %402 = arith.divf %400, %401 : vector<2x32xf32>
    %403 = vector.extract_strided_slice %393 {offsets = [0, 32], sizes = [2, 32], strides = [1, 1]} : vector<2x96xf32> to vector<2x32xf32>
    %404 = vector.extract_strided_slice %394 {offsets = [0, 32], sizes = [2, 32], strides = [1, 1]} : vector<2x96xf32> to vector<2x32xf32>
    %405 = arith.addf %403, %404 : vector<2x32xf32>
    %406 = arith.negf %405 : vector<2x32xf32>
    %407 = math.exp %406 : vector<2x32xf32>
    %cst_92 = arith.constant 1.000000e+00 : f32
    %408 = vector.broadcast %cst_92 : f32 to vector<2x32xf32>
    %409 = arith.addf %408, %407 : vector<2x32xf32>
    %410 = arith.divf %408, %409 : vector<2x32xf32>
    %411 = vector.extract_strided_slice %393 {offsets = [0, 64], sizes = [2, 32], strides = [1, 1]} : vector<2x96xf32> to vector<2x32xf32>
    %412 = vector.extract_strided_slice %394 {offsets = [0, 64], sizes = [2, 32], strides = [1, 1]} : vector<2x96xf32> to vector<2x32xf32>
    %413 = vector.broadcast %267 : vector<1x32xf32> to vector<2x32xf32>
    %414 = arith.addf %412, %413 : vector<2x32xf32>
    %415 = arith.mulf %402, %414 : vector<2x32xf32>
    %416 = arith.addf %411, %415 : vector<2x32xf32>
    %417 = math.tanh %416 : vector<2x32xf32>
    %cst_93 = arith.constant 1.000000e+00 : f32
    %418 = vector.broadcast %cst_93 : f32 to vector<2x32xf32>
    %419 = arith.subf %418, %410 : vector<2x32xf32>
    %420 = arith.mulf %419, %417 : vector<2x32xf32>
    %421 = arith.mulf %410, %391 : vector<2x32xf32>
    %422 = arith.addf %420, %421 : vector<2x32xf32>
    %c8_94 = arith.constant 8 : index
    %c0_95 = arith.constant 0 : index
    %423 = vector.load %arg13[%c8_94, %c0_95] : memref<16x32xf32, #tpu.memory_space<vmem>>, vector<2x32xf32>
    tpu.vector_store %arg13[%c8_94, %c0_95], %422 {strides = array<i32>} : memref<16x32xf32, #tpu.memory_space<vmem>>, vector<2x32xf32>,
    %424 = vector.extract_strided_slice %265 {offsets = [10, 0], sizes = [2, 96], strides = [1, 1]} : vector<16x96xf32> to vector<2x96xf32>
    %cst_96 = arith.constant dense<0.000000e+00> : vector<2x96xf32>
    %425 = tpu.matmul %422, %266, %cst_96 {dimension_numbers = #tpu.dot_dimension_numbers<[1], [0], [0], [1], [0, 0, 1, 1], [], []>} : vector<2x32xf32>, vector<32x96xf32>, vector<2x96xf32> -> vector<2x96xf32>
    %426 = vector.extract_strided_slice %424 {offsets = [0, 0], sizes = [2, 32], strides = [1, 1]} : vector<2x96xf32> to vector<2x32xf32>
    %427 = vector.extract_strided_slice %425 {offsets = [0, 0], sizes = [2, 32], strides = [1, 1]} : vector<2x96xf32> to vector<2x32xf32>
    %428 = arith.addf %426, %427 : vector<2x32xf32>
    %429 = arith.negf %428 : vector<2x32xf32>
    %430 = math.exp %429 : vector<2x32xf32>
    %cst_97 = arith.constant 1.000000e+00 : f32
    %431 = vector.broadcast %cst_97 : f32 to vector<2x32xf32>
    %432 = arith.addf %431, %430 : vector<2x32xf32>
    %433 = arith.divf %431, %432 : vector<2x32xf32>
    %434 = vector.extract_strided_slice %424 {offsets = [0, 32], sizes = [2, 32], strides = [1, 1]} : vector<2x96xf32> to vector<2x32xf32>
    %435 = vector.extract_strided_slice %425 {offsets = [0, 32], sizes = [2, 32], strides = [1, 1]} : vector<2x96xf32> to vector<2x32xf32>
    %436 = arith.addf %434, %435 : vector<2x32xf32>
    %437 = arith.negf %436 : vector<2x32xf32>
    %438 = math.exp %437 : vector<2x32xf32>
    %cst_98 = arith.constant 1.000000e+00 : f32
    %439 = vector.broadcast %cst_98 : f32 to vector<2x32xf32>
    %440 = arith.addf %439, %438 : vector<2x32xf32>
    %441 = arith.divf %439, %440 : vector<2x32xf32>
    %442 = vector.extract_strided_slice %424 {offsets = [0, 64], sizes = [2, 32], strides = [1, 1]} : vector<2x96xf32> to vector<2x32xf32>
    %443 = vector.extract_strided_slice %425 {offsets = [0, 64], sizes = [2, 32], strides = [1, 1]} : vector<2x96xf32> to vector<2x32xf32>
    %444 = vector.broadcast %267 : vector<1x32xf32> to vector<2x32xf32>
    %445 = arith.addf %443, %444 : vector<2x32xf32>
    %446 = arith.mulf %433, %445 : vector<2x32xf32>
    %447 = arith.addf %442, %446 : vector<2x32xf32>
    %448 = math.tanh %447 : vector<2x32xf32>
    %cst_99 = arith.constant 1.000000e+00 : f32
    %449 = vector.broadcast %cst_99 : f32 to vector<2x32xf32>
    %450 = arith.subf %449, %441 : vector<2x32xf32>
    %451 = arith.mulf %450, %448 : vector<2x32xf32>
    %452 = arith.mulf %441, %422 : vector<2x32xf32>
    %453 = arith.addf %451, %452 : vector<2x32xf32>
    %c10_100 = arith.constant 10 : index
    %c0_101 = arith.constant 0 : index
    %454 = vector.load %arg13[%c10_100, %c0_101] : memref<16x32xf32, #tpu.memory_space<vmem>>, vector<2x32xf32>
    tpu.vector_store %arg13[%c10_100, %c0_101], %453 {strides = array<i32>} : memref<16x32xf32, #tpu.memory_space<vmem>>, vector<2x32xf32>,
    %455 = vector.extract_strided_slice %265 {offsets = [12, 0], sizes = [2, 96], strides = [1, 1]} : vector<16x96xf32> to vector<2x96xf32>
    %cst_102 = arith.constant dense<0.000000e+00> : vector<2x96xf32>
    %456 = tpu.matmul %453, %266, %cst_102 {dimension_numbers = #tpu.dot_dimension_numbers<[1], [0], [0], [1], [0, 0, 1, 1], [], []>} : vector<2x32xf32>, vector<32x96xf32>, vector<2x96xf32> -> vector<2x96xf32>
    %457 = vector.extract_strided_slice %455 {offsets = [0, 0], sizes = [2, 32], strides = [1, 1]} : vector<2x96xf32> to vector<2x32xf32>
    %458 = vector.extract_strided_slice %456 {offsets = [0, 0], sizes = [2, 32], strides = [1, 1]} : vector<2x96xf32> to vector<2x32xf32>
    %459 = arith.addf %457, %458 : vector<2x32xf32>
    %460 = arith.negf %459 : vector<2x32xf32>
    %461 = math.exp %460 : vector<2x32xf32>
    %cst_103 = arith.constant 1.000000e+00 : f32
    %462 = vector.broadcast %cst_103 : f32 to vector<2x32xf32>
    %463 = arith.addf %462, %461 : vector<2x32xf32>
    %464 = arith.divf %462, %463 : vector<2x32xf32>
    %465 = vector.extract_strided_slice %455 {offsets = [0, 32], sizes = [2, 32], strides = [1, 1]} : vector<2x96xf32> to vector<2x32xf32>
    %466 = vector.extract_strided_slice %456 {offsets = [0, 32], sizes = [2, 32], strides = [1, 1]} : vector<2x96xf32> to vector<2x32xf32>
    %467 = arith.addf %465, %466 : vector<2x32xf32>
    %468 = arith.negf %467 : vector<2x32xf32>
    %469 = math.exp %468 : vector<2x32xf32>
    %cst_104 = arith.constant 1.000000e+00 : f32
    %470 = vector.broadcast %cst_104 : f32 to vector<2x32xf32>
    %471 = arith.addf %470, %469 : vector<2x32xf32>
    %472 = arith.divf %470, %471 : vector<2x32xf32>
    %473 = vector.extract_strided_slice %455 {offsets = [0, 64], sizes = [2, 32], strides = [1, 1]} : vector<2x96xf32> to vector<2x32xf32>
    %474 = vector.extract_strided_slice %456 {offsets = [0, 64], sizes = [2, 32], strides = [1, 1]} : vector<2x96xf32> to vector<2x32xf32>
    %475 = vector.broadcast %267 : vector<1x32xf32> to vector<2x32xf32>
    %476 = arith.addf %474, %475 : vector<2x32xf32>
    %477 = arith.mulf %464, %476 : vector<2x32xf32>
    %478 = arith.addf %473, %477 : vector<2x32xf32>
    %479 = math.tanh %478 : vector<2x32xf32>
    %cst_105 = arith.constant 1.000000e+00 : f32
    %480 = vector.broadcast %cst_105 : f32 to vector<2x32xf32>
    %481 = arith.subf %480, %472 : vector<2x32xf32>
    %482 = arith.mulf %481, %479 : vector<2x32xf32>
    %483 = arith.mulf %472, %453 : vector<2x32xf32>
    %484 = arith.addf %482, %483 : vector<2x32xf32>
    %c12_106 = arith.constant 12 : index
    %c0_107 = arith.constant 0 : index
    %485 = vector.load %arg13[%c12_106, %c0_107] : memref<16x32xf32, #tpu.memory_space<vmem>>, vector<2x32xf32>
    tpu.vector_store %arg13[%c12_106, %c0_107], %484 {strides = array<i32>} : memref<16x32xf32, #tpu.memory_space<vmem>>, vector<2x32xf32>,
    %486 = vector.extract_strided_slice %265 {offsets = [14, 0], sizes = [2, 96], strides = [1, 1]} : vector<16x96xf32> to vector<2x96xf32>
    %cst_108 = arith.constant dense<0.000000e+00> : vector<2x96xf32>
    %487 = tpu.matmul %484, %266, %cst_108 {dimension_numbers = #tpu.dot_dimension_numbers<[1], [0], [0], [1], [0, 0, 1, 1], [], []>} : vector<2x32xf32>, vector<32x96xf32>, vector<2x96xf32> -> vector<2x96xf32>
    %488 = vector.extract_strided_slice %486 {offsets = [0, 0], sizes = [2, 32], strides = [1, 1]} : vector<2x96xf32> to vector<2x32xf32>
    %489 = vector.extract_strided_slice %487 {offsets = [0, 0], sizes = [2, 32], strides = [1, 1]} : vector<2x96xf32> to vector<2x32xf32>
    %490 = arith.addf %488, %489 : vector<2x32xf32>
    %491 = arith.negf %490 : vector<2x32xf32>
    %492 = math.exp %491 : vector<2x32xf32>
    %cst_109 = arith.constant 1.000000e+00 : f32
    %493 = vector.broadcast %cst_109 : f32 to vector<2x32xf32>
    %494 = arith.addf %493, %492 : vector<2x32xf32>
    %495 = arith.divf %493, %494 : vector<2x32xf32>
    %496 = vector.extract_strided_slice %486 {offsets = [0, 32], sizes = [2, 32], strides = [1, 1]} : vector<2x96xf32> to vector<2x32xf32>
    %497 = vector.extract_strided_slice %487 {offsets = [0, 32], sizes = [2, 32], strides = [1, 1]} : vector<2x96xf32> to vector<2x32xf32>
    %498 = arith.addf %496, %497 : vector<2x32xf32>
    %499 = arith.negf %498 : vector<2x32xf32>
    %500 = math.exp %499 : vector<2x32xf32>
    %cst_110 = arith.constant 1.000000e+00 : f32
    %501 = vector.broadcast %cst_110 : f32 to vector<2x32xf32>
    %502 = arith.addf %501, %500 : vector<2x32xf32>
    %503 = arith.divf %501, %502 : vector<2x32xf32>
    %504 = vector.extract_strided_slice %486 {offsets = [0, 64], sizes = [2, 32], strides = [1, 1]} : vector<2x96xf32> to vector<2x32xf32>
    %505 = vector.extract_strided_slice %487 {offsets = [0, 64], sizes = [2, 32], strides = [1, 1]} : vector<2x96xf32> to vector<2x32xf32>
    %506 = vector.broadcast %267 : vector<1x32xf32> to vector<2x32xf32>
    %507 = arith.addf %505, %506 : vector<2x32xf32>
    %508 = arith.mulf %495, %507 : vector<2x32xf32>
    %509 = arith.addf %504, %508 : vector<2x32xf32>
    %510 = math.tanh %509 : vector<2x32xf32>
    %cst_111 = arith.constant 1.000000e+00 : f32
    %511 = vector.broadcast %cst_111 : f32 to vector<2x32xf32>
    %512 = arith.subf %511, %503 : vector<2x32xf32>
    %513 = arith.mulf %512, %510 : vector<2x32xf32>
    %514 = arith.mulf %503, %484 : vector<2x32xf32>
    %515 = arith.addf %513, %514 : vector<2x32xf32>
    %c14_112 = arith.constant 14 : index
    %c0_113 = arith.constant 0 : index
    %516 = vector.load %arg13[%c14_112, %c0_113] : memref<16x32xf32, #tpu.memory_space<vmem>>, vector<2x32xf32>
    tpu.vector_store %arg13[%c14_112, %c0_113], %515 {strides = array<i32>} : memref<16x32xf32, #tpu.memory_space<vmem>>, vector<2x32xf32>,
    %c1 = arith.constant 1 : index
    %c0_114 = arith.constant 0 : index
    %c0_115 = arith.constant 0 : index
    %517 = vector.load %arg12[%c1, %c0_114, %c0_115] : memref<2x2x32xf32, #tpu.memory_space<vmem>>, vector<1x2x32xf32>
    %518 = vector.shape_cast %517 : vector<1x2x32xf32> to vector<2x32xf32>
    %519 = vector.shape_cast %515 : vector<2x32xf32> to vector<1x2x32xf32>
    tpu.vector_store %arg12[%c1, %c0_114, %c0_115], %519 {strides = array<i32>} : memref<2x2x32xf32, #tpu.memory_space<vmem>>, vector<1x2x32xf32>,
    %c0_116 = arith.constant 0 : index
    %c0_117 = arith.constant 0 : index
    %520 = vector.load %arg13[%c0_116, %c0_117] : memref<16x32xf32, #tpu.memory_space<vmem>>, vector<16x32xf32>
    %c0_118 = arith.constant 0 : index
    %c0_119 = arith.constant 0 : index
    %521 = vector.load %arg9[%c0_118, %c0_119] : memref<32x128xf32, #tpu.memory_space<vmem>>, vector<32x128xf32>
    %cst_120 = arith.constant dense<0.000000e+00> : vector<16x128xf32>
    %522 = tpu.matmul %520, %521, %cst_120 {dimension_numbers = #tpu.dot_dimension_numbers<[1], [0], [0], [1], [0, 0, 1, 1], [], []>} : vector<16x32xf32>, vector<32x128xf32>, vector<16x128xf32> -> vector<16x128xf32>
    %c0_121 = arith.constant 0 : index
    %c0_122 = arith.constant 0 : index
    %523 = vector.load %arg10[%c0_121, %c0_122] : memref<1x128xf32, #tpu.memory_space<vmem>>, vector<1x128xf32>
    %524 = vector.broadcast %523 : vector<1x128xf32> to vector<16x128xf32>
    %525 = arith.addf %522, %524 : vector<16x128xf32>
    %c0_123 = arith.constant 0 : index
    %c0_124 = arith.constant 0 : index
    %526 = vector.load %arg11[%c0_123, %c0_124] : memref<16x128xf32, #tpu.memory_space<vmem>>, vector<16x128xf32>
    tpu.vector_store %arg11[%c0_123, %c0_124], %525 {strides = array<i32>} : memref<16x128xf32, #tpu.memory_space<vmem>>, vector<16x128xf32>,
    return
  }
}

</mosaic_0001>

<bundles_post_ra>
// kernel: model_forward.1
= control target key start
LH: loop header
LB: loop body
LE: loop exit
PB: predicated region body
PF: predicated region fallthrough
CT: control target
= control target key end

     0   :  { %vm49_vm0 = vcmask 130048   ;;  %s1555_s16 = smov 64   ;;  %s1975_s0 = inlined_call_operand.vmem [shape: f32[16,16], index: 0, kind: input, shape index: {}]   ;;  %s1976_s1 = inlined_call_operand.vmem [shape: f32[16,96], index: 1, kind: input, shape index: {}]   ;;  %s1977_s2 = inlined_call_operand.vmem [shape: f32[32,96], index: 2, kind: input, shape index: {}]   ;;  %s1978_s3 = inlined_call_operand.vmem [shape: f32[1,96], index: 3, kind: input, shape index: {}]   ;;  %s1979_s4 = inlined_call_operand.vmem [shape: f32[1,32], index: 4, kind: input, shape index: {}]   ;;  %s1980_s5 = inlined_call_operand.vmem [shape: f32[32,96], index: 5, kind: input, shape index: {}]   ;;  %s1981_s6 = inlined_call_operand.vmem [shape: f32[32,96], index: 6, kind: input, shape index: {}]   ;;  %s1982_s7 = inlined_call_operand.vmem [shape: f32[1,96], index: 7, kind: input, shape index: {}]   ;;  %s1983_s8 = inlined_call_operand.vmem [shape: f32[1,32], index: 8, kind: input, shape index: {}]   ;;  %s1984_s9 = inlined_call_operand.vmem [shape: f32[32,128], index: 9, kind: input, shape index: {}]   ;;  %s1985_s10 = inlined_call_operand.vmem [shape: f32[1,128], index: 10, kind: input, shape index: {}]   ;;  %s1986_s11 = inlined_call_operand.vmem [shape: f32[16,128], index: 11, kind: output, shape index: {0}]   ;;  %s1987_s12 = inlined_call_operand.hbm [shape: f32[2,2,32], index: 12, kind: output, shape index: {1}]  }
   0x1   :  { %v44_v0 = vld [vmem:[%s1976_s1 + $0x8] sm:$0xff]  ;;  %v43_v1 = vld [vmem:[%s1976_s1] sm:$0xff]  ;;  %v82_v3 = vld [vmem:[%s1977_s2 + $0x18] sm:$0xff] }
   0x2   :  { %1420 = vmatpush.msra.mxu1 %v44_v0  ;;  %v42_v2 = vld [vmem:[%s1975_s0 + $0x8] sm:$0xff]  ;;  %70 = vmatpush.msra.mxu0 %v44_v0  ;;  %v41_v4 = vld [vmem:[%s1975_s0] sm:$0xff]  ;;  %v81_v5 = vld [vmem:[%s1977_s2 + $0x10] sm:$0xff] }
   0x3   :  { %173 = vmatpush.msra.mxu2 %v82_v3  ;;  %250 = vmatpush.msra.mxu3 %v82_v3  ;;  %v1428_v6 = vld [vmem:[%s1979_s4] ss:$0 sm:$0xff] }
   0x4   :  { %1421 = vmatpush.msra.mxu1 %v43_v1  ;;  %71 = vmatpush.msra.mxu0 %v43_v1 }
   0x5   :  { %1385 = vmatmul.msk.f32.vlgmr.msra.gmra.mxu1 %vm49_vm0, %v42_v2  ;;  %1384 = vmatmul.msk.f32.vlgmr.msra.gmra.mxu0 %vm49_vm0, %v41_v4 }
   0x6   :  { %100 = vmatpush.msrb.mxu1 %v82_v3  ;;  %130 = vrot.lane.b32.xlu0 %v1428_v6, %s1555_s16 }
   0x7   :  { %18 = vsyncpa [#allocation4], 0  ;;  %v80_v7 = vld [vmem:[%s1977_s2 + $0x8] sm:$0xff]  ;;  %174 = vmatpush.msra.mxu2 %v81_v5  ;;  %251 = vmatpush.msra.mxu3 %v81_v5  ;;  %v79_v8 = vld [vmem:[%s1977_s2] sm:$0xff]  ;;  %v1556_v9 = vmov 0.0   ;;  %vm157_vm5 = vcmask 254976  }
   0x8   :  { %101 = vmatpush.msrb.mxu1 %v81_v5  ;;  %548 = vmatpush.msrb.mxu0 %v82_v3  ;;  %v1429_v10 = vld [vmem:[%s1978_s3] ss:$0 sm:$0xff]  ;;  %s1557_s3 = smov 96   ;;  %vm84_vm6 = vcmask 261120   ;;  %s1370_s25 = sshll.u32 %s1987_s12, 4  ;;  %s1371_s25 = int_to_ptr.hbm [resolvable:$true] %s1370_s25 }
   0x9   :  { %175 = vmatpush.msra.mxu2 %v80_v7  ;;  %252 = vmatpush.msra.mxu3 %v80_v7  ;;  %s1560_s26 = smov 2  }
   0xa   :  { %102 = vmatpush.msrb.mxu1 %v80_v7  ;;  %549 = vmatpush.msrb.mxu0 %v81_v5 }
   0xb   :  { %176 = vmatpush.msra.mxu2 %v79_v8  ;;  %253 = vmatpush.msra.mxu3 %v79_v8 }
   0xc   :  { %103 = vmatpush.msrb.mxu1 %v79_v8  ;;  %550 = vmatpush.msrb.mxu0 %v80_v7 }
   0xd   :  { %404 = vmatpush.msrb.mxu2 %v82_v3  ;;  %104 = vmatmul.f32.vlgmr.msrb.gmra.mxu1 %v1556_v9 }
   0xe   :  { %472 = vmatpush.msrb.mxu3 %v82_v3  ;;  %327 = vmatpush.msra.mxu1 %v82_v3 }
   0xf   :  { %405 = vmatpush.msrb.mxu2 %v81_v5  ;;  %551 = vmatpush.msrb.mxu0 %v79_v8 }
  0x10   :  { %473 = vmatpush.msrb.mxu3 %v81_v5  ;;  %328 = vmatpush.msra.mxu1 %v81_v5 }
  0x11   :  { %406 = vmatpush.msrb.mxu2 %v80_v7 }
  0x12   :  { %474 = vmatpush.msrb.mxu3 %v80_v7  ;;  %329 = vmatpush.msra.mxu1 %v80_v7 }
  0x13   :  { %407 = vmatpush.msrb.mxu2 %v79_v8 }
  0x14   :  { %475 = vmatpush.msrb.mxu3 %v79_v8  ;;  %330 = vmatpush.msra.mxu1 %v79_v8 }
  0x16   :  { %624 = vmatpush.msrb.mxu1 %v82_v3 }
  0x18   :  { %625 = vmatpush.msrb.mxu1 %v81_v5 }
  0x1a   :  { %626 = vmatpush.msrb.mxu1 %v80_v7 }
  0x1c   :  { %627 = vmatpush.msrb.mxu1 %v79_v8 }
  0x78   :  { %v1660_v13 = vpop.permute.xlu0 %130 }
  0x82   :  { %v76_v11 = vpop.f32.mrf.mxu1  ;;  %v73_v16 = vpop.f32.mrf.mxu0 }
  0x83   :  { %v1658_v12 = vadd.f32 %v1429_v10, %v76_v11  ;;  %v1664_v17 = vadd.f32 %v1429_v10, %v73_v16 }
  0x8a   :  { %v105_v14 = vpop.f32.mrf.mxu1 }
  0x8b   :  { %v133_v15 = vadd.f32 %v1660_v13, %v105_v14  ;;  %v108_v18 = vadd.f32 %v105_v14, %v1664_v17 }
  0x8d   :  { %135 = vrot.lane.b32.xlu0 %v133_v15, %s1555_s16  ;;  %v1386_v19 = vmul.f32 -1.442695, %v108_v18 }
  0x8f   :  { %1433 = vpow2.f32 %v1386_v19 }
  0x95   :  { %v1434_v20 = vpop.eup %1433 }
  0x96   :  { %v112_v21 = vadd.f32 1.0, %v1434_v20 }
  0x98   :  { %1435 = vrcp.f32 %v112_v21  ;;  %v124_v27 = vand.u32 2147483648, %v112_v21  ;;  %vm118_vm2 = vweird.f32 %v112_v21  ;;  %v122_v28 = vand.u32 2147483647, %v112_v21 }
  0x9a   :  { %v125_v30 = vor.u32 1.1754944e-38, %v124_v27  ;;  %vm123_vm4 = vcmp.eq.f32.partialorder %v122_v28, 8.507059e+37 }
  0x9e   :  { %v1436_v22 = vpop.eup %1435 }
  0x9f   :  { %v114_v23 = vmul.f32 %v1436_v22, %v112_v21  ;;  %vm119_vm1 = vweird.f32 %v1436_v22 }
  0xa0   :  { %vm120_vm3 = vmor %vm118_vm2, %vm119_vm1 }
  0xa1   :  { %v115_v24 = vsub.f32 1.0, %v114_v23 }
  0xa3   :  { %v116_v25 = vmul.f32 %v1436_v22, %v115_v24 }
  0xa5   :  { %v117_v26 = vadd.f32 %v1436_v22, %v116_v25 }
  0xa7   :  { %v121_v29 = vsel %vm120_vm3, %v1436_v22, %v117_v26 }
  0xa8   :  { %v126_v32 = vsel %vm123_vm4, %v125_v30, %v121_v29 }
  0xa9   :  { %v145_v37 = vsub.f32 1.0, %v126_v32  ;;  %v151_v40 = vmul.f32 0.0, %v126_v32 }
  0xff   :  { %v136_v31 = vpop.permute.xlu0 %135 }
 0x100   :  { %v138_v33 = vmul.f32 %v136_v31, %v126_v32 }
 0x102   :  { %140 = vrot.lane.b32.xlu1 %v138_v33, %s1555_s16 }
 0x174   :  { %v141_v34 = vpop.permute.xlu1 %140 }
 0x175   :  { %v143_v35 = vadd.f32 %v141_v34, %v1664_v17 }
 0x177   :  { %1437 = vtanh.f32 %v143_v35 }
 0x17d   :  { %v1438_v36 = vpop.eup %1437 }
 0x17e   :  { %147 = vrot.lane.b32.xlu1 %v1438_v36, %s1557_s3 }
 0x1f0   :  { %v148_v38 = vpop.permute.xlu1 %147 }
 0x1f1   :  { %v150_v39 = vmul.f32 %v148_v38, %v145_v37 }
 0x1f3   :  { %v152_v41 = vadd.f32 %v151_v40, %v150_v39 }
 0x1f5   :  { %154 = vrot.lane.b32.xlu2 %v152_v41, %s1557_s3  ;;  %v223_v59 = vrot.slane %v152_v41, 6 }
 0x24f   :  { %v155_v42 = vpop.permute.xlu2 %154 }
 0x250   :  { %158 = vst.msk [vmem:[#allocation2] sm:$0x3] %vm157_vm5, %v155_v42  ;;  %1387 = vmatmul.msk.f32.vlgmr.msra.gmra.mxu2 %vm84_vm6, %v155_v42 }
 0x2d3   :  { %v178_v43 = vpop.f32.mrf.mxu2 }
 0x2d4   :  { %v182_v44 = vrot.slane %v178_v43, 6  ;;  %v204_v45 = vadd.f32 %v178_v43, %v1660_v13 }
 0x2d6   :  { %v184_v46 = vadd.f32 %v182_v44, %v1664_v17  ;;  %v206_v47 = vrot.slane %v204_v45, 6 }
 0x2d8   :  { %v1388_v48 = vmul.f32 -1.442695, %v184_v46  ;;  %207 = vrot.lane.b32.xlu2 %v206_v47, %s1555_s16 }
 0x2da   :  { %1439 = vpow2.f32 %v1388_v48 }
 0x2e0   :  { %v1440_v49 = vpop.eup %1439 }
 0x2e1   :  { %v188_v50 = vadd.f32 1.0, %v1440_v49 }
 0x2e3   :  { %1441 = vrcp.f32 %v188_v50  ;;  %v200_v54 = vand.u32 2147483648, %v188_v50  ;;  %v198_v56 = vand.u32 2147483647, %v188_v50  ;;  %vm194_vm8 = vweird.f32 %v188_v50 }
 0x2e5   :  { %v201_v58 = vor.u32 1.1754944e-38, %v200_v54  ;;  %vm199_vm10 = vcmp.eq.f32.partialorder %v198_v56, 8.507059e+37 }
 0x2e9   :  { %v1442_v51 = vpop.eup %1441 }
 0x2ea   :  { %v190_v52 = vmul.f32 %v1442_v51, %v188_v50  ;;  %vm195_vm7 = vweird.f32 %v1442_v51 }
 0x2eb   :  { %vm196_vm9 = vmor %vm194_vm8, %vm195_vm7 }
 0x2ec   :  { %v191_v53 = vsub.f32 1.0, %v190_v52 }
 0x2ee   :  { %v192_v55 = vmul.f32 %v1442_v51, %v191_v53 }
 0x2f0   :  { %v193_v57 = vadd.f32 %v1442_v51, %v192_v55 }
 0x2f2   :  { %v197_v60 = vsel %vm196_vm9, %v1442_v51, %v193_v57  ;;  %vm231_vm9 = vcmask 257026  }
 0x2f3   :  { %v202_v61 = vsel %vm199_vm10, %v201_v58, %v197_v60  ;;  %vm308_vm10 = vcmask 259076  }
 0x2f4   :  { %v225_v62 = vmul.f32 %v223_v59, %v202_v61  ;;  %v217_v4 = vsub.f32 1.0, %v202_v61 }
 0x332   :  { %v208_v63 = vpop.permute.xlu2 %207 }
 0x333   :  { %v210_v0 = vmul.f32 %v208_v63, %v202_v61 }
 0x335   :  { %212 = vrot.lane.b32.xlu0 %v210_v0, %s1555_s16 }
 0x3a7   :  { %v213_v1 = vpop.permute.xlu0 %212 }
 0x3a8   :  { %v215_v2 = vadd.f32 %v213_v1, %v1664_v17 }
 0x3aa   :  { %1443 = vtanh.f32 %v215_v2 }
 0x3b0   :  { %v1444_v3 = vpop.eup %1443 }
 0x3b1   :  { %219 = vrot.lane.b32.xlu1 %v1444_v3, %s1557_s3 }
 0x423   :  { %v220_v5 = vpop.permute.xlu1 %219 }
 0x424   :  { %v222_v6 = vmul.f32 %v220_v5, %v217_v4 }
 0x426   :  { %v1679_v7 = vadd.f32 %v225_v62, %v222_v6 }
 0x428   :  { %v233_v8 = vrot.slane %v1679_v7, 2  ;;  %v300_v38 = vrot.slane %v1679_v7, 6 }
 0x42a   :  { %234 = vrot.lane.b32.xlu2 %v233_v8, %s1557_s3 }
 0x484   :  { %v235_v10 = vpop.permute.xlu2 %234 }
 0x485   :  { %1389 = vmatmul.msk.f32.vlgmr.msra.gmra.mxu3 %vm84_vm6, %v235_v10 }
 0x508   :  { %v255_v11 = vpop.f32.mrf.mxu3 }
 0x509   :  { %v281_v14 = vadd.f32 %v255_v11, %v1660_v13  ;;  %v259_v16 = vrot.slane %v255_v11, 4 }
 0x50b   :  { %v283_v15 = vrot.slane %v281_v14, 4  ;;  %v261_v18 = vadd.f32 %v259_v16, %v1664_v17 }
 0x50d   :  { %284 = vrot.lane.b32.xlu0 %v283_v15, %s1555_s16  ;;  %v1390_v19 = vmul.f32 -1.442695, %v261_v18 }
 0x50f   :  { %1445 = vpow2.f32 %v1390_v19 }
 0x515   :  { %v1446_v20 = vpop.eup %1445 }
 0x516   :  { %v265_v21 = vadd.f32 1.0, %v1446_v20 }
 0x518   :  { %1447 = vrcp.f32 %v265_v21  ;;  %v277_v27 = vand.u32 2147483648, %v265_v21  ;;  %vm271_vm12 = vweird.f32 %v265_v21  ;;  %v275_v28 = vand.u32 2147483647, %v265_v21 }
 0x51a   :  { %v278_v30 = vor.u32 1.1754944e-38, %v277_v27  ;;  %vm276_vm14 = vcmp.eq.f32.partialorder %v275_v28, 8.507059e+37 }
 0x51e   :  { %v1448_v22 = vpop.eup %1447 }
 0x51f   :  { %v267_v23 = vmul.f32 %v1448_v22, %v265_v21  ;;  %vm272_vm11 = vweird.f32 %v1448_v22 }
 0x520   :  { %vm273_vm13 = vmor %vm271_vm12, %vm272_vm11  ;;  %vm385_vm11 = vcmask 261126  }
 0x521   :  { %v268_v24 = vsub.f32 1.0, %v267_v23 }
 0x523   :  { %v269_v25 = vmul.f32 %v1448_v22, %v268_v24 }
 0x525   :  { %v270_v26 = vadd.f32 %v1448_v22, %v269_v25 }
 0x527   :  { %v274_v29 = vsel %vm273_vm13, %v1448_v22, %v270_v26 }
 0x528   :  { %v279_v32 = vsel %vm276_vm14, %v278_v30, %v274_v29 }
 0x529   :  { %v294_v37 = vsub.f32 1.0, %v279_v32  ;;  %v302_v40 = vmul.f32 %v300_v38, %v279_v32 }
 0x57f   :  { %v285_v31 = vpop.permute.xlu0 %284 }
 0x580   :  { %v287_v33 = vmul.f32 %v285_v31, %v279_v32 }
 0x582   :  { %289 = vrot.lane.b32.xlu1 %v287_v33, %s1555_s16 }
 0x5f4   :  { %v290_v34 = vpop.permute.xlu1 %289 }
 0x5f5   :  { %v292_v35 = vadd.f32 %v290_v34, %v1664_v17 }
 0x5f7   :  { %1449 = vtanh.f32 %v292_v35 }
 0x5fd   :  { %v1450_v36 = vpop.eup %1449 }
 0x5fe   :  { %296 = vrot.lane.b32.xlu2 %v1450_v36, %s1557_s3 }
 0x658   :  { %v297_v39 = vpop.permute.xlu2 %296 }
 0x659   :  { %v299_v41 = vmul.f32 %v297_v39, %v294_v37 }
 0x65b   :  { %v1691_v42 = vadd.f32 %v302_v40, %v299_v41 }
 0x65d   :  { %v310_v43 = vrot.slane %v1691_v42, 4  ;;  %v377_v5 = vrot.slane %v1691_v42, 6 }
 0x65f   :  { %311 = vrot.lane.b32.xlu0 %v310_v43, %s1557_s3 }
 0x6d1   :  { %v312_v44 = vpop.permute.xlu0 %311 }
 0x6d2   :  { %1391 = vmatmul.msk.f32.vlgmr.msra.gmra.mxu1 %vm84_vm6, %v312_v44  ;;  %v1725_v44 = vld [vmem:[%s1981_s6 + $0x18] sm:$0xff] }
 0x6d3   :  { %740 = vmatpush.msra.mxu3 %v1725_v44  ;;  %812 = vmatpush.msra.mxu0 %v1725_v44 }
 0x6d4   :  { %888 = vmatpush.msra.mxu1 %v1725_v44 }
 0x74f   :  { %v332_v45 = vpop.f32.mrf.mxu1 }
 0x750   :  { %v358_v46 = vadd.f32 %v332_v45, %v1660_v13  ;;  %v336_v48 = vrot.slane %v332_v45, 2  ;;  %v1737_v45 = vld [vmem:[%s1981_s6 + $0x8] sm:$0xff] }
 0x752   :  { %v360_v47 = vrot.slane %v358_v46, 2  ;;  %v338_v49 = vadd.f32 %v336_v48, %v1664_v17  ;;  %v1745_v46 = vld [vmem:[%s1981_s6] sm:$0xff]  ;;  %v688_v48 = vld [vmem:[%s1980_s5 + $0x10] sm:$0xff] }
 0x754   :  { %361 = vrot.lane.b32.xlu1 %v360_v47, %s1555_s16  ;;  %v1392_v50 = vmul.f32 -1.442695, %v338_v49  ;;  %v689_v47 = vld [vmem:[%s1980_s5 + $0x18] sm:$0xff]  ;;  %v687_v49 = vld [vmem:[%s1980_s5 + $0x8] sm:$0xff] }
 0x755   :  { %712 = vmatpush.msra.mxu2 %v689_v47 }
 0x756   :  { %1451 = vpow2.f32 %v1392_v50  ;;  %v686_v50 = vld [vmem:[%s1980_s5] sm:$0xff] }
 0x757   :  { %713 = vmatpush.msra.mxu2 %v688_v48 }
 0x759   :  { %714 = vmatpush.msra.mxu2 %v687_v49 }
 0x75b   :  { %715 = vmatpush.msra.mxu2 %v686_v50 }
 0x75c   :  { %v1452_v51 = vpop.eup %1451 }
 0x75d   :  { %v342_v52 = vadd.f32 1.0, %v1452_v51  ;;  %v1430_v51 = vld [vmem:[%s1983_s8] ss:$0 sm:$0xff] }
 0x75f   :  { %1453 = vrcp.f32 %v342_v52  ;;  %v354_v58 = vand.u32 2147483648, %v342_v52  ;;  %vm348_vm0 = vweird.f32 %v342_v52  ;;  %v352_v59 = vand.u32 2147483647, %v342_v52 }
 0x761   :  { %v355_v61 = vor.u32 1.1754944e-38, %v354_v58  ;;  %vm353_vm2 = vcmp.eq.f32.partialorder %v352_v59, 8.507059e+37 }
 0x765   :  { %v1454_v53 = vpop.eup %1453 }
 0x766   :  { %v344_v54 = vmul.f32 %v1454_v53, %v342_v52  ;;  %vm349_vm15 = vweird.f32 %v1454_v53 }
 0x767   :  { %vm350_vm1 = vmor %vm348_vm0, %vm349_vm15 }
 0x768   :  { %v345_v55 = vsub.f32 1.0, %v344_v54 }
 0x76a   :  { %v346_v56 = vmul.f32 %v1454_v53, %v345_v55 }
 0x76c   :  { %v347_v57 = vadd.f32 %v1454_v53, %v346_v56 }
 0x76e   :  { %v351_v60 = vsel %vm350_vm1, %v1454_v53, %v347_v57 }
 0x76f   :  { %v356_v63 = vsel %vm353_vm2, %v355_v61, %v351_v60  ;;  %v1796_v60 = vld [vmem:[%s1982_s7] ss:$0 sm:$0xff] }
 0x770   :  { %v371_v4 = vsub.f32 1.0, %v356_v63  ;;  %v379_v8 = vmul.f32 %v377_v5, %v356_v63 }
 0x7c6   :  { %v362_v62 = vpop.permute.xlu1 %361 }
 0x7c7   :  { %v364_v0 = vmul.f32 %v362_v62, %v356_v63 }
 0x7c9   :  { %366 = vrot.lane.b32.xlu2 %v364_v0, %s1555_s16 }
 0x823   :  { %v367_v1 = vpop.permute.xlu2 %366 }
 0x824   :  { %v369_v2 = vadd.f32 %v367_v1, %v1664_v17 }
 0x826   :  { %1455 = vtanh.f32 %v369_v2 }
 0x82c   :  { %v1456_v3 = vpop.eup %1455 }
 0x82d   :  { %373 = vrot.lane.b32.xlu0 %v1456_v3, %s1557_s3 }
 0x89f   :  { %v374_v6 = vpop.permute.xlu0 %373 }
 0x8a0   :  { %v376_v10 = vmul.f32 %v374_v6, %v371_v4 }
 0x8a2   :  { %v380_v11 = vadd.f32 %v379_v8, %v376_v10 }
 0x8a4   :  { %v387_v14 = vrot.slane %v380_v11, 6 }
 0x8a6   :  { %388 = vrot.lane.b32.xlu1 %v387_v14, %s1557_s3 }
 0x918   :  { %v389_v15 = vpop.permute.xlu1 %388 }
 0x919   :  { %1393 = vmatmul.msk.f32.vlgmr.msrb.gmra.mxu2 %vm84_vm6, %v389_v15 }
 0x91a   :  { %1184 = vmatpush.msrb.mxu2 %v1725_v44 }
 0x99c   :  { %v409_v16 = vpop.f32.mrf.mxu2 }
 0x99d   :  { %v432_v17 = vadd.f32 %v409_v16, %v1660_v13  ;;  %v412_v18 = vadd.f32 %v409_v16, %v1658_v12 }
 0x99f   :  { %434 = vrot.lane.b32.xlu2 %v432_v17, %s1555_s16  ;;  %v1394_v19 = vmul.f32 -1.442695, %v412_v18 }
 0x9a1   :  { %1457 = vpow2.f32 %v1394_v19 }
 0x9a7   :  { %v1458_v20 = vpop.eup %1457 }
 0x9a8   :  { %v416_v21 = vadd.f32 1.0, %v1458_v20 }
 0x9aa   :  { %1459 = vrcp.f32 %v416_v21  ;;  %v428_v27 = vand.u32 2147483648, %v416_v21  ;;  %vm422_vm4 = vweird.f32 %v416_v21  ;;  %v426_v28 = vand.u32 2147483647, %v416_v21 }
 0x9ac   :  { %v429_v30 = vor.u32 1.1754944e-38, %v428_v27  ;;  %vm427_vm8 = vcmp.eq.f32.partialorder %v426_v28, 8.507059e+37 }
 0x9b0   :  { %v1460_v22 = vpop.eup %1459 }
 0x9b1   :  { %v418_v23 = vmul.f32 %v1460_v22, %v416_v21  ;;  %vm423_vm3 = vweird.f32 %v1460_v22 }
 0x9b2   :  { %vm424_vm7 = vmor %vm422_vm4, %vm423_vm3 }
 0x9b3   :  { %v419_v24 = vsub.f32 1.0, %v418_v23 }
 0x9b5   :  { %v420_v25 = vmul.f32 %v1460_v22, %v419_v24 }
 0x9b7   :  { %v421_v26 = vadd.f32 %v1460_v22, %v420_v25 }
 0x9b9   :  { %v425_v29 = vsel %vm424_vm7, %v1460_v22, %v421_v26 }
 0x9ba   :  { %v430_v32 = vsel %vm427_vm8, %v429_v30, %v425_v29 }
 0x9bb   :  { %v444_v38 = vsub.f32 1.0, %v430_v32  ;;  %v451_v40 = vmul.f32 %v430_v32, %v387_v14 }
 0x9f9   :  { %v435_v31 = vpop.permute.xlu2 %434 }
 0x9fa   :  { %v437_v33 = vmul.f32 %v435_v31, %v430_v32 }
 0x9fc   :  { %439 = vrot.lane.b32.xlu0 %v437_v33, %s1555_s16 }
 0xa04   :  { %228 = vrot.lane.b32.xlu0 %v1679_v7, %s1557_s3 }
 0xa0c   :  { %770 = vrot.lane.b32.xlu0 %v1430_v51, %s1555_s16 }
 0xa6e   :  { %v440_v34 = vpop.permute.xlu0 %439 }
 0xa6f   :  { %v442_v35 = vadd.f32 %v440_v34, %v1658_v12 }
 0xa71   :  { %1461 = vtanh.f32 %v442_v35 }
 0xa76   :  { %v229_v36 = vpop.permute.xlu0 %228 }
 0xa77   :  { %v1462_v37 = vpop.eup %1461  ;;  %232 = vst.msk [vmem:[#allocation2] sm:$0xc] %vm231_vm9, %v229_v36 }
 0xa78   :  { %446 = vrot.lane.b32.xlu1 %v1462_v37, %s1557_s3 }
 0xa7e   :  { %v1789_v58 = vpop.permute.xlu0 %770 }
 0xa80   :  { %305 = vrot.lane.b32.xlu1 %v1691_v42, %s1557_s3  ;;  %v1730_v42 = vld [vmem:[%s1981_s6 + $0x10] sm:$0xff] }
 0xa81   :  { %741 = vmatpush.msra.mxu3 %v1730_v42  ;;  %813 = vmatpush.msra.mxu0 %v1730_v42 }
 0xa82   :  { %889 = vmatpush.msra.mxu1 %v1730_v42  ;;  %1185 = vmatpush.msrb.mxu2 %v1730_v42 }
 0xa83   :  { %742 = vmatpush.msra.mxu3 %v1737_v45  ;;  %814 = vmatpush.msra.mxu0 %v1737_v45 }
 0xa84   :  { %890 = vmatpush.msra.mxu1 %v1737_v45  ;;  %1186 = vmatpush.msrb.mxu2 %v1737_v45 }
 0xa85   :  { %743 = vmatpush.msra.mxu3 %v1745_v46  ;;  %815 = vmatpush.msra.mxu0 %v1745_v46 }
 0xa86   :  { %891 = vmatpush.msra.mxu1 %v1745_v46  ;;  %1187 = vmatpush.msrb.mxu2 %v1745_v46 }
 0xaea   :  { %v447_v39 = vpop.permute.xlu1 %446 }
 0xaeb   :  { %v449_v41 = vmul.f32 %v447_v39, %v444_v38 }
 0xaed   :  { %v1716_v43 = vadd.f32 %v451_v40, %v449_v41 }
 0xaef   :  { %454 = vrot.lane.b32.xlu2 %v1716_v43, %s1557_s3 }
 0xaf2   :  { %v306_v7 = vpop.permute.xlu1 %305 }
 0xaf3   :  { %309 = vst.msk [vmem:[#allocation2] sm:$0x30] %vm308_vm10, %v306_v7  ;;  %v522_v7 = vrot.slane %v1716_v43, 6 }
 0xaf7   :  { %382 = vrot.lane.b32.xlu2 %v380_v11, %s1557_s3 }
 0xb49   :  { %v455_v52 = vpop.permute.xlu2 %454 }
 0xb4a   :  { %457 = vst.msk [vmem:[#allocation2 + $0x8] sm:$0x3] %vm157_vm5, %v455_v52  ;;  %1395 = vmatmul.msk.f32.vlgmr.msrb.gmra.mxu3 %vm84_vm6, %v455_v52 }
 0xb4b   :  { %964 = vmatpush.msrb.mxu3 %v1725_v44 }
 0xb4d   :  { %965 = vmatpush.msrb.mxu3 %v1730_v42 }
 0xb4f   :  { %966 = vmatpush.msrb.mxu3 %v1737_v45 }
 0xb51   :  { %v383_v53 = vpop.permute.xlu2 %382  ;;  %967 = vmatpush.msrb.mxu3 %v1745_v46 }
 0xb52   :  { %386 = vst.msk [vmem:[#allocation2] sm:$0xc0] %vm385_vm11, %v383_v53  ;;  %744 = vmatmul.f32.vlgmr.msra.gmra.mxu3 %v1556_v9 }
 0xb53   :  { %1260 = vmatpush.msra.mxu3 %v1725_v44 }
 0xb55   :  { %1261 = vmatpush.msra.mxu3 %v1730_v42 }
 0xb57   :  { %1262 = vmatpush.msra.mxu3 %v1737_v45 }
 0xb59   :  { %v684_v54 = vld [vmem:[#allocation2] sm:$0xff]  ;;  %1263 = vmatpush.msra.mxu3 %v1745_v46 }
 0xb5a   :  { %1401 = vmatmul.msk.f32.vlgmr.msra.gmra.mxu2 %vm84_vm6, %v684_v54 }
 0xbcd   :  { %v477_v55 = vpop.f32.mrf.mxu3 }
 0xbce   :  { %v503_v56 = vadd.f32 %v477_v55, %v1660_v13  ;;  %v481_v2 = vrot.slane %v477_v55, 6 }
 0xbd0   :  { %v505_v57 = vrot.slane %v503_v56, 6  ;;  %v483_v4 = vadd.f32 %v481_v2, %v1658_v12 }
 0xbd2   :  { %506 = vrot.lane.b32.xlu1 %v505_v57, %s1555_s16  ;;  %v1396_v5 = vmul.f32 -1.442695, %v483_v4 }
 0xbd5   :  { %v745_v9 = vpop.f32.mrf.mxu3 }
 0xbd6   :  { %v773_v59 = vadd.f32 %v1789_v58, %v745_v9 }
 0xbd8   :  { %775 = vrot.lane.b32.xlu2 %v773_v59, %s1555_s16 }
 0xbdd   :  { %v717_v61 = vpop.f32.mrf.mxu2 }
 0xbde   :  { %v1799_v62 = vadd.f32 %v1796_v60, %v717_v61 }
 0xbe0   :  { %v748_v63 = vadd.f32 %v745_v9, %v1799_v62 }
 0xbe2   :  { %v1403_v0 = vmul.f32 -1.442695, %v748_v63 }
 0xbe4   :  { %1463 = vpow2.f32 %v1403_v0 }
 0xbea   :  { %v1464_v1 = vpop.eup %1463 }
 0xbeb   :  { %v752_v3 = vadd.f32 1.0, %v1464_v1 }
 0xbed   :  { %1465 = vrcp.f32 %v752_v3  ;;  %v764_v17 = vand.u32 2147483648, %v752_v3  ;;  %vm758_vm13 = vweird.f32 %v752_v3  ;;  %v762_v18 = vand.u32 2147483647, %v752_v3 }
 0xbee   :  { %1467 = vpow2.f32 %v1396_v5 }
 0xbef   :  { %v765_v21 = vor.u32 1.1754944e-38, %v764_v17  ;;  %vm763_vm15 = vcmp.eq.f32.partialorder %v762_v18, 8.507059e+37 }
 0xbf3   :  { %v1466_v6 = vpop.eup %1465 }
 0xbf4   :  { %v754_v8 = vmul.f32 %v1466_v6, %v752_v3  ;;  %v1468_v10 = vpop.eup %1467  ;;  %vm759_vm12 = vweird.f32 %v1466_v6 }
 0xbf5   :  { %v487_v14 = vadd.f32 1.0, %v1468_v10  ;;  %vm760_vm14 = vmor %vm758_vm13, %vm759_vm12 }
 0xbf6   :  { %v755_v11 = vsub.f32 1.0, %v754_v8 }
 0xbf7   :  { %1469 = vrcp.f32 %v487_v14  ;;  %v499_v29 = vand.u32 2147483648, %v487_v14  ;;  %vm493_vm1 = vweird.f32 %v487_v14  ;;  %v497_v30 = vand.u32 2147483647, %v487_v14 }
 0xbf8   :  { %v756_v15 = vmul.f32 %v1466_v6, %v755_v11 }
 0xbf9   :  { %v500_v32 = vor.u32 1.1754944e-38, %v499_v29  ;;  %vm498_vm3 = vcmp.eq.f32.partialorder %v497_v30, 8.507059e+37 }
 0xbfa   :  { %v757_v16 = vadd.f32 %v1466_v6, %v756_v15 }
 0xbfc   :  { %v761_v20 = vsel %vm760_vm14, %v1466_v6, %v757_v16 }
 0xbfd   :  { %v1470_v19 = vpop.eup %1469  ;;  %v766_v23 = vsel %vm763_vm15, %v765_v21, %v761_v20 }
 0xbfe   :  { %v489_v22 = vmul.f32 %v1470_v19, %v487_v14  ;;  %vm494_vm0 = vweird.f32 %v1470_v19  ;;  %v785_v52 = vsub.f32 1.0, %v766_v23  ;;  %v791_v55 = vmul.f32 0.0, %v766_v23 }
 0xbff   :  { %vm495_vm2 = vmor %vm493_vm1, %vm494_vm0 }
 0xc00   :  { %v490_v26 = vsub.f32 1.0, %v489_v22 }
 0xc02   :  { %v491_v27 = vmul.f32 %v1470_v19, %v490_v26 }
 0xc04   :  { %v492_v28 = vadd.f32 %v1470_v19, %v491_v27 }
 0xc06   :  { %v496_v31 = vsel %vm495_vm2, %v1470_v19, %v492_v28 }
 0xc07   :  { %v501_v33 = vsel %vm498_vm3, %v500_v32, %v496_v31 }
 0xc08   :  { %v516_v47 = vsub.f32 1.0, %v501_v33  ;;  %v524_v49 = vmul.f32 %v522_v7, %v501_v33 }
 0xc32   :  { %v776_v24 = vpop.permute.xlu2 %775 }
 0xc33   :  { %v778_v25 = vmul.f32 %v776_v24, %v766_v23 }
 0xc35   :  { %780 = vrot.lane.b32.xlu1 %v778_v25, %s1555_s16 }
 0xc44   :  { %v507_v34 = vpop.permute.xlu1 %506 }
 0xc45   :  { %v509_v35 = vmul.f32 %v507_v34, %v501_v33 }
 0xc47   :  { %511 = vrot.lane.b32.xlu0 %v509_v35, %s1555_s16 }
 0xca7   :  { %v781_v36 = vpop.permute.xlu1 %780 }
 0xca8   :  { %v783_v37 = vadd.f32 %v781_v36, %v1799_v62 }
 0xcaa   :  { %1471 = vtanh.f32 %v783_v37 }
 0xcb0   :  { %v1472_v38 = vpop.eup %1471 }
 0xcb1   :  { %787 = vrot.lane.b32.xlu0 %v1472_v38, %s1557_s3 }
 0xcb9   :  { %v512_v39 = vpop.permute.xlu0 %511 }
 0xcba   :  { %v514_v40 = vadd.f32 %v512_v39, %v1658_v12 }
 0xcbc   :  { %1473 = vtanh.f32 %v514_v40 }
 0xcc2   :  { %v1474_v41 = vpop.eup %1473 }
 0xcc3   :  { %518 = vrot.lane.b32.xlu2 %v1474_v41, %s1557_s3 }
 0xd1d   :  { %v519_v48 = vpop.permute.xlu2 %518 }
 0xd1e   :  { %v521_v50 = vmul.f32 %v519_v48, %v516_v47 }
 0xd20   :  { %v1810_v51 = vadd.f32 %v524_v49, %v521_v50 }
 0xd22   :  { %v531_v53 = vrot.slane %v1810_v51, 2 }
 0xd23   :  { %v788_v54 = vpop.permute.xlu0 %787 }
 0xd24   :  { %v790_v56 = vmul.f32 %v788_v54, %v785_v52  ;;  %532 = vrot.lane.b32.xlu1 %v531_v53, %s1557_s3  ;;  %v598_v53 = vrot.slane %v1810_v51, 6 }
 0xd26   :  { %v1814_v57 = vadd.f32 %v791_v55, %v790_v56 }
 0xd28   :  { %794 = vrot.lane.b32.xlu2 %v1814_v57, %s1557_s3 }
 0xd82   :  { %v795_v43 = vpop.permute.xlu2 %794 }
 0xd83   :  { %797 = vst.msk [vmem:[#allocation2] sm:$0x3] %vm157_vm5, %v795_v43 }
 0xd96   :  { %v533_v9 = vpop.permute.xlu1 %532 }
 0xd97   :  { %1397 = vmatmul.msk.f32.vlgmr.msrb.gmra.mxu0 %vm84_vm6, %v533_v9 }
 0xd98   :  { %1040 = vmatpush.msrb.mxu0 %v1725_v44 }
 0xd9a   :  { %1041 = vmatpush.msrb.mxu0 %v1730_v42 }
 0xd9c   :  { %1042 = vmatpush.msrb.mxu0 %v1737_v45 }
 0xd9e   :  { %1043 = vmatpush.msrb.mxu0 %v1745_v46 }
 0xd9f   :  { %1404 = vmatmul.msk.f32.vlgmr.msra.gmra.mxu0 %vm84_vm6, %v795_v43 }
 0xe14   :  { %v553_v59 = vpop.f32.mrf.mxu0 }
 0xe15   :  { %v579_v61 = vadd.f32 %v553_v59, %v1660_v13  ;;  %v557_v3 = vrot.slane %v553_v59, 4  ;;  %v862_v59 = vrot.slane %v1814_v57, 6 }
 0xe17   :  { %v581_v63 = vrot.slane %v579_v61, 4  ;;  %v559_v4 = vadd.f32 %v557_v3, %v1658_v12 }
 0xe19   :  { %582 = vrot.lane.b32.xlu0 %v581_v63, %s1555_s16  ;;  %v1398_v5 = vmul.f32 -1.442695, %v559_v4 }
 0xe1b   :  { %1475 = vpow2.f32 %v1398_v5 }
 0xe1c   :  { %v817_v0 = vpop.f32.mrf.mxu0 }
 0xe1d   :  { %v843_v1 = vadd.f32 %v817_v0, %v1789_v58  ;;  %v821_v6 = vrot.slane %v817_v0, 6 }
 0xe1f   :  { %v845_v2 = vrot.slane %v843_v1, 6  ;;  %v823_v8 = vadd.f32 %v821_v6, %v1799_v62 }
 0xe21   :  { %846 = vrot.lane.b32.xlu1 %v845_v2, %s1555_s16  ;;  %v1405_v10 = vmul.f32 -1.442695, %v823_v8  ;;  %v1476_v11 = vpop.eup %1475 }
 0xe22   :  { %v563_v14 = vadd.f32 1.0, %v1476_v11 }
 0xe23   :  { %1477 = vpow2.f32 %v1405_v10 }
 0xe24   :  { %1479 = vrcp.f32 %v563_v14  ;;  %v575_v25 = vand.u32 2147483648, %v563_v14  ;;  %vm569_vm7 = vweird.f32 %v563_v14  ;;  %v573_v26 = vand.u32 2147483647, %v563_v14 }
 0xe26   :  { %v576_v29 = vor.u32 1.1754944e-38, %v575_v25  ;;  %vm574_vm12 = vcmp.eq.f32.partialorder %v573_v26, 8.507059e+37 }
 0xe29   :  { %v1478_v15 = vpop.eup %1477 }
 0xe2a   :  { %v827_v16 = vadd.f32 1.0, %v1478_v15  ;;  %v1480_v17 = vpop.eup %1479 }
 0xe2b   :  { %v565_v18 = vmul.f32 %v1480_v17, %v563_v14  ;;  %vm570_vm4 = vweird.f32 %v1480_v17 }
 0xe2c   :  { %1481 = vrcp.f32 %v827_v16  ;;  %vm571_vm8 = vmor %vm569_vm7, %vm570_vm4  ;;  %v839_v34 = vand.u32 2147483648, %v827_v16  ;;  %vm833_vm14 = vweird.f32 %v827_v16  ;;  %v837_v35 = vand.u32 2147483647, %v827_v16 }
 0xe2d   :  { %v566_v19 = vsub.f32 1.0, %v565_v18 }
 0xe2e   :  { %v840_v37 = vor.u32 1.1754944e-38, %v839_v34  ;;  %vm838_vm0 = vcmp.eq.f32.partialorder %v837_v35, 8.507059e+37 }
 0xe2f   :  { %v567_v21 = vmul.f32 %v1480_v17, %v566_v19 }
 0xe31   :  { %v568_v23 = vadd.f32 %v1480_v17, %v567_v21 }
 0xe32   :  { %v1482_v20 = vpop.eup %1481 }
 0xe33   :  { %v829_v22 = vmul.f32 %v1482_v20, %v827_v16  ;;  %v572_v27 = vsel %vm571_vm8, %v1480_v17, %v568_v23  ;;  %vm834_vm13 = vweird.f32 %v1482_v20 }
 0xe34   :  { %v577_v30 = vsel %vm574_vm12, %v576_v29, %v572_v27  ;;  %vm835_vm15 = vmor %vm833_vm14, %vm834_vm13 }
 0xe35   :  { %v830_v24 = vsub.f32 1.0, %v829_v22  ;;  %v592_v52 = vsub.f32 1.0, %v577_v30  ;;  %v600_v55 = vmul.f32 %v598_v53, %v577_v30 }
 0xe37   :  { %v831_v28 = vmul.f32 %v1482_v20, %v830_v24 }
 0xe39   :  { %v832_v33 = vadd.f32 %v1482_v20, %v831_v28 }
 0xe3b   :  { %v836_v36 = vsel %vm835_vm15, %v1482_v20, %v832_v33 }
 0xe3c   :  { %v841_v39 = vsel %vm838_vm0, %v840_v37, %v836_v36 }
 0xe3d   :  { %v856_v61 = vsub.f32 1.0, %v841_v39  ;;  %v864_v0 = vmul.f32 %v862_v59, %v841_v39 }
 0xe8b   :  { %v583_v31 = vpop.permute.xlu0 %582 }
 0xe8c   :  { %v585_v32 = vmul.f32 %v583_v31, %v577_v30 }
 0xe8e   :  { %587 = vrot.lane.b32.xlu2 %v585_v32, %s1555_s16 }
 0xe93   :  { %v847_v38 = vpop.permute.xlu1 %846 }
 0xe94   :  { %v849_v40 = vmul.f32 %v847_v38, %v841_v39 }
 0xe96   :  { %851 = vrot.lane.b32.xlu0 %v849_v40, %s1555_s16 }
 0xee8   :  { %v588_v41 = vpop.permute.xlu2 %587 }
 0xee9   :  { %v590_v7 = vadd.f32 %v588_v41, %v1658_v12 }
 0xeeb   :  { %1483 = vtanh.f32 %v590_v7 }
 0xef1   :  { %v1484_v47 = vpop.eup %1483 }
 0xef2   :  { %594 = vrot.lane.b32.xlu1 %v1484_v47, %s1557_s3 }
 0xf08   :  { %v852_v48 = vpop.permute.xlu0 %851 }
 0xf09   :  { %v854_v49 = vadd.f32 %v852_v48, %v1799_v62 }
 0xf0b   :  { %1485 = vtanh.f32 %v854_v49 }
 0xf11   :  { %v1486_v50 = vpop.eup %1485 }
 0xf12   :  { %858 = vrot.lane.b32.xlu2 %v1486_v50, %s1557_s3 }
 0xf64   :  { %v595_v54 = vpop.permute.xlu1 %594 }
 0xf65   :  { %v597_v56 = vmul.f32 %v595_v54, %v592_v52 }
 0xf67   :  { %v1838_v43 = vadd.f32 %v600_v55, %v597_v56 }
 0xf69   :  { %v607_v9 = vrot.slane %v1838_v43, 4 }
 0xf6b   :  { %608 = vrot.lane.b32.xlu0 %v607_v9, %s1557_s3 }
 0xf6c   :  { %v859_v63 = vpop.permute.xlu2 %858 }
 0xf6d   :  { %v861_v1 = vmul.f32 %v859_v63, %v856_v61 }
 0xf6f   :  { %v1843_v2 = vadd.f32 %v864_v0, %v861_v1 }
 0xf71   :  { %v871_v3 = vrot.slane %v1843_v2, 2  ;;  %v938_v39 = vrot.slane %v1843_v2, 6 }
 0xf73   :  { %872 = vrot.lane.b32.xlu1 %v871_v3, %s1557_s3 }
 0xfdd   :  { %v609_v4 = vpop.permute.xlu0 %608 }
 0xfde   :  { %1399 = vmatmul.msk.f32.vlgmr.msrb.gmra.mxu1 %vm84_vm6, %v609_v4 }
 0xfdf   :  { %1108 = vmatpush.msrb.mxu1 %v1725_v44 }
 0xfe1   :  { %1109 = vmatpush.msrb.mxu1 %v1730_v42 }
 0xfe3   :  { %1110 = vmatpush.msrb.mxu1 %v1737_v45 }
 0xfe5   :  { %v873_v57 = vpop.permute.xlu1 %872  ;;  %1111 = vmatpush.msrb.mxu1 %v1745_v46 }
 0xfe6   :  { %1406 = vmatmul.msk.f32.vlgmr.msra.gmra.mxu1 %vm84_vm6, %v873_v57 }
0x105b   :  { %v629_v5 = vpop.f32.mrf.mxu1 }
0x105c   :  { %v655_v26 = vadd.f32 %v629_v5, %v1660_v13  ;;  %v633_v31 = vrot.slane %v629_v5, 2 }
0x105e   :  { %v657_v27 = vrot.slane %v655_v26, 2  ;;  %v635_v32 = vadd.f32 %v633_v31, %v1658_v12 }
0x1060   :  { %v1400_v33 = vmul.f32 -1.442695, %v635_v32 }
0x1063   :  { %v893_v6 = vpop.f32.mrf.mxu1 }
0x1064   :  { %v919_v8 = vadd.f32 %v893_v6, %v1789_v58  ;;  %v897_v11 = vrot.slane %v893_v6, 4 }
0x1066   :  { %v921_v10 = vrot.slane %v919_v8, 4  ;;  %v899_v14 = vadd.f32 %v897_v11, %v1799_v62 }
0x1068   :  { %922 = vrot.lane.b32.xlu2 %v921_v10, %s1555_s16  ;;  %v1407_v44 = vmul.f32 -1.442695, %v899_v14 }
0x106a   :  { %1487 = vpow2.f32 %v1407_v44 }
0x1070   :  { %v1488_v42 = vpop.eup %1487 }
0x1071   :  { %v903_v15 = vadd.f32 1.0, %v1488_v42 }
0x1073   :  { %1489 = vrcp.f32 %v903_v15  ;;  %v915_v19 = vand.u32 2147483648, %v903_v15  ;;  %vm909_vm2 = vweird.f32 %v903_v15  ;;  %v913_v20 = vand.u32 2147483647, %v903_v15 }
0x1075   :  { %v916_v22 = vor.u32 1.1754944e-38, %v915_v19  ;;  %vm914_vm4 = vcmp.eq.f32.partialorder %v913_v20, 8.507059e+37 }
0x1079   :  { %v1490_v45 = vpop.eup %1489 }
0x107a   :  { %v905_v16 = vmul.f32 %v1490_v45, %v903_v15  ;;  %vm910_vm1 = vweird.f32 %v1490_v45 }
0x107b   :  { %vm911_vm3 = vmor %vm909_vm2, %vm910_vm1 }
0x107c   :  { %v906_v46 = vsub.f32 1.0, %v905_v16 }
0x107e   :  { %v907_v17 = vmul.f32 %v1490_v45, %v906_v46 }
0x1080   :  { %v908_v18 = vadd.f32 %v1490_v45, %v907_v17 }
0x1082   :  { %v912_v21 = vsel %vm911_vm3, %v1490_v45, %v908_v18 }
0x1083   :  { %v917_v24 = vsel %vm914_vm4, %v916_v22, %v912_v21 }
0x1084   :  { %v932_v38 = vsub.f32 1.0, %v917_v24  ;;  %v940_v7 = vmul.f32 %v938_v39, %v917_v24 }
0x10c2   :  { %v923_v23 = vpop.permute.xlu2 %922 }
0x10c3   :  { %v925_v25 = vmul.f32 %v923_v23, %v917_v24 }
0x10c5   :  { %927 = vrot.lane.b32.xlu0 %v925_v25, %s1555_s16 }
0x10cd   :  { %658 = vrot.lane.b32.xlu0 %v657_v27, %s1555_s16 }
0x1137   :  { %v928_v28 = vpop.permute.xlu0 %927 }
0x1138   :  { %v930_v29 = vadd.f32 %v928_v28, %v1799_v62  ;;  %v674_v28 = vrot.slane %v1838_v43, 6 }
0x113a   :  { %1491 = vtanh.f32 %v930_v29 }
0x113b   :  { %1493 = vpow2.f32 %v1400_v33 }
0x113f   :  { %v659_v55 = vpop.permute.xlu0 %658 }
0x1140   :  { %v1492_v30 = vpop.eup %1491 }
0x1141   :  { %934 = vrot.lane.b32.xlu1 %v1492_v30, %s1557_s3  ;;  %v1494_v34 = vpop.eup %1493 }
0x1142   :  { %v639_v35 = vadd.f32 1.0, %v1494_v34 }
0x1144   :  { %1495 = vrcp.f32 %v639_v35  ;;  %v651_v52 = vand.u32 2147483648, %v639_v35  ;;  %vm645_vm8 = vweird.f32 %v639_v35  ;;  %v649_v53 = vand.u32 2147483647, %v639_v35 }
0x1146   :  { %v652_v56 = vor.u32 1.1754944e-38, %v651_v52  ;;  %vm650_vm13 = vcmp.eq.f32.partialorder %v649_v53, 8.507059e+37 }
0x114a   :  { %v1496_v36 = vpop.eup %1495 }
0x114b   :  { %v641_v13 = vmul.f32 %v1496_v36, %v639_v35  ;;  %vm646_vm7 = vweird.f32 %v1496_v36 }
0x114c   :  { %vm647_vm12 = vmor %vm645_vm8, %vm646_vm7 }
0x114d   :  { %v642_v37 = vsub.f32 1.0, %v641_v13 }
0x114f   :  { %v643_v41 = vmul.f32 %v1496_v36, %v642_v37 }
0x1151   :  { %v644_v49 = vadd.f32 %v1496_v36, %v643_v41 }
0x1153   :  { %v648_v54 = vsel %vm647_vm12, %v1496_v36, %v644_v49 }
0x1154   :  { %v653_v9 = vsel %vm650_vm13, %v652_v56, %v648_v54 }
0x1155   :  { %v661_v59 = vmul.f32 %v659_v55, %v653_v9  ;;  %v668_v27 = vsub.f32 1.0, %v653_v9  ;;  %v676_v30 = vmul.f32 %v674_v28, %v653_v9 }
0x11b3   :  { %v935_v40 = vpop.permute.xlu1 %934 }
0x11b4   :  { %v937_v47 = vmul.f32 %v935_v40, %v932_v38 }
0x11b6   :  { %v1863_v48 = vadd.f32 %v940_v7, %v937_v47 }
0x11b8   :  { %v947_v50 = vrot.slane %v1863_v48, 4  ;;  %v1014_v32 = vrot.slane %v1863_v48, 6 }
0x11ba   :  { %948 = vrot.lane.b32.xlu2 %v947_v50, %s1557_s3 }
0x11c2   :  { %663 = vrot.lane.b32.xlu2 %v661_v59, %s1555_s16 }
0x1214   :  { %v949_v61 = vpop.permute.xlu2 %948 }
0x1215   :  { %1408 = vmatmul.msk.f32.vlgmr.msrb.gmra.mxu3 %vm84_vm6, %v949_v61 }
0x121c   :  { %v664_v63 = vpop.permute.xlu2 %663 }
0x121d   :  { %v666_v3 = vadd.f32 %v664_v63, %v1658_v12 }
0x121f   :  { %1497 = vtanh.f32 %v666_v3 }
0x1225   :  { %v1498_v57 = vpop.eup %1497 }
0x1298   :  { %v969_v0 = vpop.f32.mrf.mxu3 }
0x1299   :  { %v995_v1 = vadd.f32 %v969_v0, %v1789_v58  ;;  %v973_v5 = vrot.slane %v969_v0, 2 }
0x129b   :  { %v997_v4 = vrot.slane %v995_v1, 2  ;;  %v975_v6 = vadd.f32 %v973_v5, %v1799_v62 }
0x129d   :  { %998 = vrot.lane.b32.xlu1 %v997_v4, %s1555_s16  ;;  %v1409_v8 = vmul.f32 -1.442695, %v975_v6 }
0x129f   :  { %1499 = vpow2.f32 %v1409_v8 }
0x12a5   :  { %670 = vrot.lane.b32.xlu1 %v1498_v57, %s1557_s3  ;;  %v1500_v10 = vpop.eup %1499 }
0x12a6   :  { %v979_v11 = vadd.f32 1.0, %v1500_v10 }
0x12a8   :  { %1501 = vrcp.f32 %v979_v11  ;;  %v991_v45 = vand.u32 2147483648, %v979_v11  ;;  %vm985_vm15 = vweird.f32 %v979_v11  ;;  %v989_v16 = vand.u32 2147483647, %v979_v11 }
0x12aa   :  { %v992_v17 = vor.u32 1.1754944e-38, %v991_v45  ;;  %vm990_vm1 = vcmp.eq.f32.partialorder %v989_v16, 8.507059e+37 }
0x12ad   :  { %603 = vrot.lane.b32.xlu1 %v1838_v43, %s1557_s3 }
0x12ae   :  { %v1502_v14 = vpop.eup %1501 }
0x12af   :  { %v981_v12 = vmul.f32 %v1502_v14, %v979_v11  ;;  %vm986_vm14 = vweird.f32 %v1502_v14 }
0x12b0   :  { %vm987_vm0 = vmor %vm985_vm15, %vm986_vm14 }
0x12b1   :  { %v982_v44 = vsub.f32 1.0, %v981_v12 }
0x12b3   :  { %v983_v42 = vmul.f32 %v1502_v14, %v982_v44 }
0x12b5   :  { %v984_v15 = vadd.f32 %v1502_v14, %v983_v42 }
0x12b7   :  { %v988_v46 = vsel %vm987_vm0, %v1502_v14, %v984_v15 }
0x12b8   :  { %v993_v19 = vsel %vm990_vm1, %v992_v17, %v988_v46 }
0x130f   :  { %v999_v18 = vpop.permute.xlu1 %998 }
0x1310   :  { %v1001_v20 = vmul.f32 %v999_v18, %v993_v19 }
0x1312   :  { %1003 = vrot.lane.b32.xlu0 %v1001_v20, %s1555_s16 }
0x1317   :  { %v671_v21 = vpop.permute.xlu1 %670 }
0x1318   :  { %v673_v29 = vmul.f32 %v671_v21, %v668_v27 }
0x131a   :  { %527 = vrot.lane.b32.xlu0 %v1810_v51, %s1557_s3  ;;  %v677_v31 = vadd.f32 %v676_v30, %v673_v29  ;;  %v1008_v51 = vsub.f32 1.0, %v993_v19 }
0x131f   :  { %v604_v22 = vpop.permute.xlu1 %603 }
0x1320   :  { %606 = vst.msk [vmem:[#allocation2 + $0x8] sm:$0x30] %vm308_vm10, %v604_v22 }
0x1384   :  { %v1004_v23 = vpop.permute.xlu0 %1003 }
0x1385   :  { %v1006_v24 = vadd.f32 %v1004_v23, %v1799_v62  ;;  %v1016_v62 = vmul.f32 %v1014_v32, %v993_v19 }
0x1387   :  { %1503 = vtanh.f32 %v1006_v24 }
0x138c   :  { %v528_v25 = vpop.permute.xlu0 %527 }
0x138d   :  { %v1504_v26 = vpop.eup %1503  ;;  %530 = vst.msk [vmem:[#allocation2 + $0x8] sm:$0xc] %vm231_vm9, %v528_v25 }
0x138e   :  { %1010 = vrot.lane.b32.xlu2 %v1504_v26, %s1557_s3 }
0x1396   :  { %679 = vrot.lane.b32.xlu2 %v677_v31, %s1557_s3 }
0x13e8   :  { %v1011_v33 = vpop.permute.xlu2 %1010 }
0x13e9   :  { %v1013_v34 = vmul.f32 %v1011_v33, %v1008_v51 }
0x13eb   :  { %v1886_v35 = vadd.f32 %v1016_v62, %v1013_v34 }
0x13ed   :  { %v1023_v36 = vrot.slane %v1886_v35, 6 }
0x13ef   :  { %1024 = vrot.lane.b32.xlu0 %v1023_v36, %s1557_s3 }
0x13f0   :  { %v680_v13 = vpop.permute.xlu2 %679 }
0x13f1   :  { %682 = vst.msk [vmem:[#allocation2 + $0x8] sm:$0xc0] %vm385_vm11, %v680_v13 }
0x13f2   :  { %683 = vst.msk [vmem:[#allocation3 - $0x6] sm:$0xc0] %vm385_vm11, %v680_v13 }
0x13f8   :  { %v685_v43 = vld [vmem:[#allocation2 + $0x8] sm:$0xff] }
0x13f9   :  { %1402 = vmatmul.msk.f32.gmra.mxu2 %vm84_vm6, %v685_v43 }
0x1461   :  { %v1025_v37 = vpop.permute.xlu0 %1024 }
0x1462   :  { %1410 = vmatmul.msk.f32.vlgmr.msrb.gmra.mxu0 %vm84_vm6, %v1025_v37 }
0x147c   :  { %v720_v40 = vpop.f32.mrf.mxu2 }
0x147d   :  { %v1897_v41 = vadd.f32 %v1796_v60, %v720_v40 }
0x14df   :  { %v1045_v38 = vpop.f32.mrf.mxu0 }
0x14e0   :  { %v1068_v39 = vadd.f32 %v1045_v38, %v1789_v58  ;;  %v1048_v7 = vadd.f32 %v1045_v38, %v1897_v41 }
0x14e2   :  { %1070 = vrot.lane.b32.xlu1 %v1068_v39, %s1555_s16  ;;  %v1411_v47 = vmul.f32 -1.442695, %v1048_v7 }
0x14e4   :  { %1505 = vpow2.f32 %v1411_v47 }
0x14ea   :  { %v1506_v49 = vpop.eup %1505 }
0x14eb   :  { %v1052_v50 = vadd.f32 1.0, %v1506_v49 }
0x14ed   :  { %1507 = vrcp.f32 %v1052_v50  ;;  %v1064_v9 = vand.u32 2147483648, %v1052_v50  ;;  %vm1058_vm3 = vweird.f32 %v1052_v50  ;;  %v1062_v59 = vand.u32 2147483647, %v1052_v50 }
0x14ef   :  { %v1065_v60 = vor.u32 1.1754944e-38, %v1064_v9  ;;  %vm1063_vm7 = vcmp.eq.f32.partialorder %v1062_v59, 8.507059e+37 }
0x14f3   :  { %v1508_v52 = vpop.eup %1507 }
0x14f4   :  { %v1054_v53 = vmul.f32 %v1508_v52, %v1052_v50  ;;  %vm1059_vm2 = vweird.f32 %v1508_v52 }
0x14f5   :  { %vm1060_vm4 = vmor %vm1058_vm3, %vm1059_vm2 }
0x14f6   :  { %v1055_v54 = vsub.f32 1.0, %v1054_v53 }
0x14f8   :  { %v1056_v55 = vmul.f32 %v1508_v52, %v1055_v54 }
0x14fa   :  { %v1057_v56 = vadd.f32 %v1508_v52, %v1056_v55 }
0x14fc   :  { %v1061_v61 = vsel %vm1060_vm4, %v1508_v52, %v1057_v56 }
0x14fd   :  { %v1066_v0 = vsel %vm1063_vm7, %v1065_v60, %v1061_v61 }
0x14fe   :  { %v1080_v5 = vsub.f32 1.0, %v1066_v0  ;;  %v1087_v8 = vmul.f32 %v1066_v0, %v1023_v36 }
0x1554   :  { %v1071_v63 = vpop.permute.xlu1 %1070 }
0x1555   :  { %v1073_v1 = vmul.f32 %v1071_v63, %v1066_v0 }
0x1557   :  { %1075 = vrot.lane.b32.xlu2 %v1073_v1, %s1555_s16 }
0x15b1   :  { %v1076_v3 = vpop.permute.xlu2 %1075 }
0x15b2   :  { %v1078_v4 = vadd.f32 %v1076_v3, %v1897_v41 }
0x15b4   :  { %1509 = vtanh.f32 %v1078_v4 }
0x15ba   :  { %v1510_v57 = vpop.eup %1509 }
0x15bb   :  { %1082 = vrot.lane.b32.xlu0 %v1510_v57, %s1557_s3 }
0x162d   :  { %v1083_v6 = vpop.permute.xlu0 %1082 }
0x162e   :  { %v1085_v10 = vmul.f32 %v1083_v6, %v1080_v5 }
0x1630   :  { %v1088_v11 = vadd.f32 %v1087_v8, %v1085_v10 }
0x1632   :  { %1090 = vrot.lane.b32.xlu1 %v1088_v11, %s1557_s3  ;;  %v1158_v26 = vrot.slane %v1088_v11, 6 }
0x16a4   :  { %v1091_v14 = vpop.permute.xlu1 %1090 }
0x16a5   :  { %1093 = vst.msk [vmem:[#allocation2 + $0x8] sm:$0x3] %vm157_vm5, %v1091_v14  ;;  %1412 = vmatmul.msk.f32.vlgmr.msrb.gmra.mxu1 %vm84_vm6, %v1091_v14 }
0x1722   :  { %v1113_v12 = vpop.f32.mrf.mxu1 }
0x1723   :  { %v1117_v44 = vrot.slane %v1113_v12, 6  ;;  %v1139_v42 = vadd.f32 %v1113_v12, %v1789_v58 }
0x1725   :  { %v1119_v15 = vadd.f32 %v1117_v44, %v1897_v41  ;;  %v1141_v45 = vrot.slane %v1139_v42, 6 }
0x1727   :  { %v1413_v16 = vmul.f32 -1.442695, %v1119_v15  ;;  %1142 = vrot.lane.b32.xlu2 %v1141_v45, %s1555_s16 }
0x1729   :  { %1511 = vpow2.f32 %v1413_v16 }
0x172f   :  { %v1512_v46 = vpop.eup %1511 }
0x1730   :  { %v1123_v17 = vadd.f32 1.0, %v1512_v46 }
0x1732   :  { %1513 = vrcp.f32 %v1123_v17  ;;  %v1135_v21 = vand.u32 2147483648, %v1123_v17  ;;  %v1133_v23 = vand.u32 2147483647, %v1123_v17  ;;  %vm1129_vm8 = vweird.f32 %v1123_v17 }
0x1734   :  { %v1136_v25 = vor.u32 1.1754944e-38, %v1135_v21  ;;  %vm1134_vm13 = vcmp.eq.f32.partialorder %v1133_v23, 8.507059e+37 }
0x1738   :  { %v1514_v18 = vpop.eup %1513 }
0x1739   :  { %v1125_v19 = vmul.f32 %v1514_v18, %v1123_v17  ;;  %vm1130_vm5 = vweird.f32 %v1514_v18 }
0x173a   :  { %vm1131_vm12 = vmor %vm1129_vm8, %vm1130_vm5 }
0x173b   :  { %v1126_v20 = vsub.f32 1.0, %v1125_v19 }
0x173d   :  { %v1127_v22 = vmul.f32 %v1514_v18, %v1126_v20 }
0x173f   :  { %v1128_v24 = vadd.f32 %v1514_v18, %v1127_v22 }
0x1741   :  { %v1132_v27 = vsel %vm1131_vm12, %v1514_v18, %v1128_v24 }
0x1742   :  { %v1137_v28 = vsel %vm1134_vm13, %v1136_v25, %v1132_v27 }
0x1743   :  { %v1160_v29 = vmul.f32 %v1158_v26, %v1137_v28  ;;  %v1152_v62 = vsub.f32 1.0, %v1137_v28 }
0x1781   :  { %v1143_v30 = vpop.permute.xlu2 %1142 }
0x1782   :  { %v1145_v31 = vmul.f32 %v1143_v30, %v1137_v28 }
0x1784   :  { %1147 = vrot.lane.b32.xlu0 %v1145_v31, %s1555_s16 }
0x17f6   :  { %v1148_v51 = vpop.permute.xlu0 %1147 }
0x17f7   :  { %v1150_v32 = vadd.f32 %v1148_v51, %v1897_v41 }
0x17f9   :  { %1515 = vtanh.f32 %v1150_v32 }
0x17ff   :  { %v1516_v33 = vpop.eup %1515 }
0x1800   :  { %1154 = vrot.lane.b32.xlu1 %v1516_v33, %s1557_s3 }
0x1872   :  { %v1155_v34 = vpop.permute.xlu1 %1154 }
0x1873   :  { %v1157_v36 = vmul.f32 %v1155_v34, %v1152_v62 }
0x1875   :  { %v1161_v13 = vadd.f32 %v1160_v29, %v1157_v36 }
0x1877   :  { %v1167_v43 = vrot.slane %v1161_v13, 2  ;;  %v1234_v8 = vrot.slane %v1161_v13, 6 }
0x1879   :  { %1168 = vrot.lane.b32.xlu2 %v1167_v43, %s1557_s3  ;;  %v1323_v43 = vld [vmem:[%s1984_s9] sm:$0xff] }
0x18d3   :  { %v1169_v37 = vpop.permute.xlu2 %1168 }
0x18d4   :  { %1414 = vmatmul.msk.f32.vlgmr.msrb.gmra.mxu2 %vm84_vm6, %v1169_v37 }
0x1957   :  { %v1189_v38 = vpop.f32.mrf.mxu2 }
0x1958   :  { %v1215_v39 = vadd.f32 %v1189_v38, %v1789_v58  ;;  %v1193_v7 = vrot.slane %v1189_v38, 4 }
0x195a   :  { %v1217_v40 = vrot.slane %v1215_v39, 4  ;;  %v1195_v47 = vadd.f32 %v1193_v7, %v1897_v41 }
0x195c   :  { %1218 = vrot.lane.b32.xlu0 %v1217_v40, %s1555_s16  ;;  %v1415_v49 = vmul.f32 -1.442695, %v1195_v47 }
0x195e   :  { %1517 = vpow2.f32 %v1415_v49 }
0x1964   :  { %v1518_v50 = vpop.eup %1517 }
0x1965   :  { %v1199_v52 = vadd.f32 1.0, %v1518_v50 }
0x1967   :  { %1519 = vrcp.f32 %v1199_v52  ;;  %v1211_v59 = vand.u32 2147483648, %v1199_v52  ;;  %vm1205_vm15 = vweird.f32 %v1199_v52  ;;  %v1209_v61 = vand.u32 2147483647, %v1199_v52 }
0x1969   :  { %v1212_v63 = vor.u32 1.1754944e-38, %v1211_v59  ;;  %vm1210_vm1 = vcmp.eq.f32.partialorder %v1209_v61, 8.507059e+37 }
0x196d   :  { %v1520_v53 = vpop.eup %1519 }
0x196e   :  { %v1201_v54 = vmul.f32 %v1520_v53, %v1199_v52  ;;  %vm1206_vm14 = vweird.f32 %v1520_v53 }
0x196f   :  { %vm1207_vm0 = vmor %vm1205_vm15, %vm1206_vm14 }
0x1970   :  { %v1202_v55 = vsub.f32 1.0, %v1201_v54 }
0x1972   :  { %v1203_v56 = vmul.f32 %v1520_v53, %v1202_v55 }
0x1974   :  { %v1204_v9 = vadd.f32 %v1520_v53, %v1203_v56 }
0x1976   :  { %v1208_v60 = vsel %vm1207_vm0, %v1520_v53, %v1204_v9  ;;  %v1432_v53 = vld [vmem:[%s1985_s10] ss:$0 sm:$0xff] }
0x1977   :  { %v1213_v1 = vsel %vm1210_vm1, %v1212_v63, %v1208_v60 }
0x1978   :  { %v1228_v6 = vsub.f32 1.0, %v1213_v1  ;;  %v1236_v11 = vmul.f32 %v1234_v8, %v1213_v1 }
0x19ce   :  { %v1219_v0 = vpop.permute.xlu0 %1218 }
0x19cf   :  { %v1221_v3 = vmul.f32 %v1219_v0, %v1213_v1 }
0x19d1   :  { %1223 = vrot.lane.b32.xlu1 %v1221_v3, %s1555_s16 }
0x1a43   :  { %v1224_v4 = vpop.permute.xlu1 %1223 }
0x1a44   :  { %v1226_v57 = vadd.f32 %v1224_v4, %v1897_v41 }
0x1a46   :  { %1521 = vtanh.f32 %v1226_v57 }
0x1a4c   :  { %v1522_v5 = vpop.eup %1521 }
0x1a4d   :  { %1230 = vrot.lane.b32.xlu2 %v1522_v5, %s1557_s3 }
0x1aa7   :  { %v1231_v10 = vpop.permute.xlu2 %1230 }
0x1aa8   :  { %v1233_v14 = vmul.f32 %v1231_v10, %v1228_v6 }
0x1aaa   :  { %v1920_v12 = vadd.f32 %v1236_v11, %v1233_v14 }
0x1aac   :  { %v1243_v44 = vrot.slane %v1920_v12, 4  ;;  %v1310_v37 = vrot.slane %v1920_v12, 6 }
0x1aae   :  { %1244 = vrot.lane.b32.xlu0 %v1243_v44, %s1557_s3 }
0x1b20   :  { %v1245_v42 = vpop.permute.xlu0 %1244 }
0x1b21   :  { %1416 = vmatmul.msk.f32.vlgmr.msra.gmra.mxu3 %vm84_vm6, %v1245_v42 }
0x1ba4   :  { %v1265_v15 = vpop.f32.mrf.mxu3 }
0x1ba5   :  { %v1291_v45 = vadd.f32 %v1265_v15, %v1789_v58  ;;  %v1269_v46 = vrot.slane %v1265_v15, 2 }
0x1ba7   :  { %v1293_v16 = vrot.slane %v1291_v45, 2  ;;  %v1271_v17 = vadd.f32 %v1269_v46, %v1897_v41 }
0x1ba9   :  { %1294 = vrot.lane.b32.xlu1 %v1293_v16, %s1555_s16  ;;  %v1417_v18 = vmul.f32 -1.442695, %v1271_v17 }
0x1bab   :  { %1523 = vpow2.f32 %v1417_v18 }
0x1bb1   :  { %867 = vrot.lane.b32.xlu1 %v1843_v2, %s1557_s3  ;;  %v1524_v19 = vpop.eup %1523 }
0x1bb2   :  { %v1275_v20 = vadd.f32 1.0, %v1524_v19 }
0x1bb4   :  { %1525 = vrcp.f32 %v1275_v20  ;;  %v1287_v25 = vand.u32 2147483648, %v1275_v20  ;;  %vm1281_vm3 = vweird.f32 %v1275_v20  ;;  %v1285_v26 = vand.u32 2147483647, %v1275_v20 }
0x1bb6   :  { %v1288_v27 = vor.u32 1.1754944e-38, %v1287_v25  ;;  %vm1286_vm7 = vcmp.eq.f32.partialorder %v1285_v26, 8.507059e+37 }
0x1bb9   :  { %1163 = vrot.lane.b32.xlu1 %v1161_v13, %s1557_s3  ;;  %v1324_v13 = vld [vmem:[%s1984_s9 + $0x8] sm:$0xff] }
0x1bba   :  { %v1526_v21 = vpop.eup %1525 }
0x1bbb   :  { %v1277_v22 = vmul.f32 %v1526_v21, %v1275_v20  ;;  %vm1282_vm2 = vweird.f32 %v1526_v21 }
0x1bbc   :  { %vm1283_vm4 = vmor %vm1281_vm3, %vm1282_vm2 }
0x1bbd   :  { %v1278_v23 = vsub.f32 1.0, %v1277_v22 }
0x1bbf   :  { %v1279_v58 = vmul.f32 %v1526_v21, %v1278_v23 }
0x1bc1   :  { %v1280_v24 = vadd.f32 %v1526_v21, %v1279_v58 }
0x1bc3   :  { %v1284_v2 = vsel %vm1283_vm4, %v1526_v21, %v1280_v24 }
0x1bc4   :  { %v1289_v29 = vsel %vm1286_vm7, %v1288_v27, %v1284_v2 }
0x1bc5   :  { %v1312_v39 = vmul.f32 %v1310_v37, %v1289_v29 }
0x1c1b   :  { %v1295_v28 = vpop.permute.xlu1 %1294 }
0x1c1c   :  { %v1297_v30 = vmul.f32 %v1295_v28, %v1289_v29 }
0x1c1e   :  { %1299 = vrot.lane.b32.xlu2 %v1297_v30, %s1555_s16 }
0x1c23   :  { %v868_v31 = vpop.permute.xlu1 %867 }
0x1c24   :  { %870 = vst.msk [vmem:[#allocation2] sm:$0xc] %vm231_vm9, %v868_v31 }
0x1c26   :  { %943 = vrot.lane.b32.xlu2 %v1863_v48, %s1557_s3  ;;  %v1326_v48 = vld [vmem:[%s1984_s9 + $0x18] sm:$0xff] }
0x1c27   :  { %1349 = vmatpush.msra.mxu0 %v1326_v48 }
0x1c2b   :  { %v1164_v51 = vpop.permute.xlu1 %1163 }
0x1c2c   :  { %1166 = vst.msk [vmem:[#allocation2 + $0x8] sm:$0xc] %vm231_vm9, %v1164_v51 }
0x1c2e   :  { %1239 = vrot.lane.b32.xlu2 %v1920_v12, %s1557_s3 }
0x1c78   :  { %v1300_v32 = vpop.permute.xlu2 %1299 }
0x1c79   :  { %v1302_v33 = vadd.f32 %v1300_v32, %v1897_v41  ;;  %v1325_v41 = vld [vmem:[%s1984_s9 + $0x10] sm:$0xff]  ;;  %s1558_s9 = smov [#allocation3]  }
0x1c7a   :  { %1350 = vmatpush.msra.mxu0 %v1325_v41  ;;  %s1368_s22 = sshll.u32 %s1558_s9, 4  ;;  %s1369_s22 = int_to_ptr.vmem [resolvable:$true] %s1368_s22 }
0x1c7b   :  { %1527 = vtanh.f32 %v1302_v33 }
0x1c7c   :  { %1351 = vmatpush.msra.mxu0 %v1324_v13 }
0x1c7e   :  { %1352 = vmatpush.msra.mxu0 %v1323_v43 }
0x1c80   :  { %v944_v62 = vpop.permute.xlu2 %943 }
0x1c81   :  { %v1528_v34 = vpop.eup %1527  ;;  %946 = vst.msk [vmem:[#allocation2] sm:$0x30] %vm308_vm10, %v944_v62 }
0x1c82   :  { %1306 = vrot.lane.b32.xlu0 %v1528_v34, %s1557_s3 }
0x1c88   :  { %v1240_v36 = vpop.permute.xlu2 %1239 }
0x1c89   :  { %1242 = vst.msk [vmem:[#allocation2 + $0x8] sm:$0x30] %vm308_vm10, %v1240_v36 }
0x1c8a   :  { %1019 = vrot.lane.b32.xlu0 %v1886_v35, %s1557_s3  ;;  %v1304_v35 = vsub.f32 1.0, %v1289_v29 }
0x1cf4   :  { %v1307_v38 = vpop.permute.xlu0 %1306 }
0x1cf5   :  { %v1309_v40 = vmul.f32 %v1307_v38, %v1304_v35 }
0x1cf7   :  { %v1313_v7 = vadd.f32 %v1312_v39, %v1309_v40 }
0x1cf9   :  { %1315 = vrot.lane.b32.xlu0 %v1313_v7, %s1557_s3  ;;  %s1559_s3 = smov 32  }
0x1cfc   :  { %v1020_v47 = vpop.permute.xlu0 %1019 }
0x1cfd   :  { %1022 = vst.msk [vmem:[#allocation2] sm:$0xc0] %vm385_vm11, %v1020_v47 }
0x1d04   :  { %v1321_v49 = vld [vmem:[#allocation2] sm:$0xff] }
0x1d05   :  { %1418 = vmatmul.msk.f32.vlgmr.msra.gmra.mxu0 %vm84_vm6, %v1321_v49 }
0x1d6b   :  { %v1316_v50 = vpop.permute.xlu0 %1315 }
0x1d6c   :  { %1318 = vst.msk [vmem:[#allocation2 + $0x8] sm:$0xc0] %vm385_vm11, %v1316_v50 }
0x1d6d   :  { %1320 = vst.msk [vmem:[#allocation3 - $0x4] sm:$0xc0] %vm385_vm11, %v1316_v50 }
0x1d6e   :  { %1376 = dma.vmem_to_hbm [thread:$0]  %s1369_s22, 64, %s1371_s25, [#allocation4], %s1559_s3, %s1559_s3, %s1560_s26  }
0x1d73   :  { %v1322_v52 = vld [vmem:[#allocation2 + $0x8] sm:$0xff] }
0x1d74   :  { %1419 = vmatmul.msk.f32.gmra.mxu0 %vm84_vm6, %v1322_v52 }
0x1d82   :  { %v1354_v54 = vpop.f32.mrf.mxu0 }
0x1d83   :  { %v1355_v55 = vadd.f32 %v1432_v53, %v1354_v54 }
0x1d85   :  { %1360 = vst [vmem:[%s1986_s11] sm:$0xff] %v1355_v55 }
0x1df1   :  { %v1357_v56 = vpop.f32.mrf.mxu0 }
0x1df2   :  { %v1358_v9 = vadd.f32 %v1432_v53, %v1357_v56 }
0x1df4   :  { %1361 = vst [vmem:[%s1986_s11 + $0x8] sm:$0xff] %v1358_v9 }
0x1df5   :  { %1553 = dma.done.wait [#allocation4], 64  }
0x1df6   :  { %1554 = vsyncadd [#allocation4], 4294967232 }
0x1df7   :  { %1383 = vsyncpa [#allocation4], 1 }

</bundles_post_ra>
